<compile_context>
chip_gen: v7x
topology: tpu7x:2x2x1
jax: 0.10.0
libtpu: 0.0.40
codegen_flags: <defaults>
</compile_context>

<pallas_src>
import functools
import math

import jax
import jax.numpy as jnp
from jax import lax
from jax.experimental import pallas as pl
from jax.experimental.pallas import tpu as pltpu


def _mha_kernel(q_ref, k_ref, v_ref,
                wq_ref, bq_ref, wk_ref, bk_ref, wv_ref, bv_ref,
                wo_ref, bo_ref, out_ref,
                *, num_heads, dim_q, dim_v, mask, matmul_dtype):
    Bt, S_q, D = q_ref.shape
    _, S_k, _ = k_ref.shape
    H = num_heads
    cdt = matmul_dtype

    # Fold (batch_tile, seq) into the matmul M dimension (trivial reshape).
    xq = q_ref[...].reshape(Bt * S_q, D)
    xk = k_ref[...].reshape(Bt * S_k, D)
    xv = v_ref[...].reshape(Bt * S_k, D)

    # --- Fused projections: one wide MXU matmul each, f32 accumulation.
    #     (1/sqrt(dim_q) already baked into wq/bq by the wrapper.)
    q_all = jnp.dot(xq.astype(cdt), wq_ref[...],
                    preferred_element_type=jnp.float32) + bq_ref[...]
    k_all = jnp.dot(xk.astype(cdt), wk_ref[...],
                    preferred_element_type=jnp.float32) + bk_ref[...]
    v_all = jnp.dot(xv.astype(cdt), wv_ref[...],
                    preferred_element_type=jnp.float32) + bv_ref[...]

    # --- Head split: one reshape + one einshape relayout per tensor
    #     (replaces the previous H lane-slices + jnp.stack).
    def to_heads(x, rows, s, d):
        xh = pltpu.einshape("mhd->hmd", x.reshape(rows, H, d))   # (H, Bt*s, d)
        return xh.reshape(H * Bt, s, d)                          # pure regroup

    q_h = to_heads(q_all, Bt * S_q, S_q, dim_q)   # (H*Bt, S_q, dq)
    k_h = to_heads(k_all, Bt * S_k, S_k, dim_q)   # (H*Bt, S_k, dq)
    v_h = to_heads(v_all, Bt * S_k, S_k, dim_v)   # (H*Bt, S_k, dv)

    # --- Scores for all (head, batch) pairs at once; contraction on the last
    #     dim (no K.T materialized).
    scores = jnp.einsum('gqd,gkd->gqk', q_h.astype(cdt), k_h.astype(cdt),
                        preferred_element_type=jnp.float32)
    if mask:   # causal: strict upper triangle -> -inf (matches the torch code)
        qi = lax.broadcasted_iota(jnp.int32, (1, S_q, S_k), 1)
        ki = lax.broadcasted_iota(jnp.int32, (1, S_q, S_k), 2)
        scores = jnp.where(ki > qi, jnp.float32(-1e30), scores)

    # --- Softmax over keys (f32); divide on the EUP.
    m = jnp.max(scores, axis=-1, keepdims=True)
    e = jnp.exp(scores - m)
    probs = e * pl.reciprocal(jnp.sum(e, axis=-1, keepdims=True), approx=True)

    # --- Context per (head, batch) pair.
    ctx = jnp.einsum('gqk,gkd->gqd', probs.astype(cdt), v_h.astype(cdt),
                     preferred_element_type=jnp.float32)

    # --- Inverse relayout, then ONE full-depth (H*dv) output-projection matmul
    #     on the MXU (fuses the per-head projections and the head-sum).
    ctx_m = pltpu.einshape("hmd->mhd", ctx.reshape(H, Bt * S_q, dim_v))
    ctx_flat = ctx_m.reshape(Bt * S_q, H * dim_v)
    out = jnp.dot(ctx_flat.astype(cdt), wo_ref[...],
                  preferred_element_type=jnp.float32) + bo_ref[...]
    out_ref[...] = out.reshape(Bt, S_q, D).astype(out_ref.dtype)


def _round_up(x, m):
    return ((x + m - 1) // m) * m


def _pad_to(a, shape):
    pads = [(0, t - s) for s, t in zip(a.shape, shape)]
    if all(p == (0, 0) for p in pads):
        return a
    return jnp.pad(a, pads)


def multi_head_attention(q, k, v, params, *, num_heads, mask=False,
                         matmul_dtype=jnp.bfloat16, batch_tile=None):
    """MultiHeadAttention.forward(Q, K, V) as a single fused Pallas kernel."""
    B, S_q, D = q.shape
    _, S_k, _ = k.shape
    H = num_heads
    dim_q = params["wq"].shape[1] // H
    dim_v = params["wv"].shape[1] // H
    scale = 1.0 / math.sqrt(dim_q)      # K.shape[2] == dim_q in the torch code

    # Whole batch per grid step by default (amortizes per-step overhead on
    # single-TC v5e/v6e); pass batch_tile=B//2 on v7x for megacore split.
    b_tile = B if batch_tile is None else batch_tile
    assert B % b_tile == 0, "batch_tile must divide the batch size"

    # Lane-dense padding: pad D and the packed head widths to multiples of 128
    # (unmasked 128-wide output stores; no 4x lane-sparse vregs for D<128).
    D_p = _round_up(D, 128)
    unit = 128 // math.gcd(H, 128)      # smallest pad with H * d_pad % 128 == 0
    dq_p = _round_up(dim_q, unit)
    dv_p = _round_up(dim_v, unit)

    # Bake the 1/sqrt(dim_q) scale into the Q projection (cheaper than scaling
    # the (H, S_q, S_k) scores tensor inside the kernel).
    wq = params["wq"] * scale
    bq = params["bq"] * scale

    def pack_qkv(w, b, d_out, d_out_p):
        w3 = _pad_to(w.reshape(D, H, d_out), (D_p, H, d_out_p))
        b3 = _pad_to(b.reshape(1, H, d_out), (1, H, d_out_p))
        return (w3.reshape(D_p, H * d_out_p).astype(matmul_dtype),
                b3.reshape(1, H * d_out_p).astype(jnp.float32))

    wq_p, bq_p = pack_qkv(wq, bq, dim_q, dq_p)
    wk_p, bk_p = pack_qkv(params["wk"], params["bk"], dim_q, dq_p)
    wv_p, bv_p = pack_qkv(params["wv"], params["bv"], dim_v, dv_p)
    wo_p = _pad_to(params["wo"].reshape(H, dim_v, D),
                   (H, dv_p, D_p)).reshape(H * dv_p, D_p).astype(matmul_dtype)
    bo_p = _pad_to(params["bo"], (1, D_p)).astype(jnp.float32)

    q_p = _pad_to(q, (B, S_q, D_p))
    k_p = _pad_to(k, (B, S_k, D_p))
    v_p = _pad_to(v, (B, S_k, D_p))

    weights = [wq_p, bq_p, wk_p, bk_p, wv_p, bv_p, wo_p, bo_p]

    def full_spec(a):
        nd = a.ndim
        return pl.BlockSpec(a.shape, lambda b, _nd=nd: (0,) * _nd)
    # TODO(synk): at production weight sizes add pipeline_mode=pl.Buffered(1)
    # to these grid-invariant weight specs to avoid double-buffering them.

    in_specs = [
        pl.BlockSpec((b_tile, S_q, D_p), lambda b: (b, 0, 0)),
        pl.BlockSpec((b_tile, S_k, D_p), lambda b: (b, 0, 0)),
        pl.BlockSpec((b_tile, S_k, D_p), lambda b: (b, 0, 0)),
    ] + [full_spec(a) for a in weights]

    kernel = functools.partial(
        _mha_kernel, num_heads=H, dim_q=dq_p, dim_v=dv_p,
        mask=mask, matmul_dtype=matmul_dtype)

    out_p = pl.pallas_call(
        kernel,
        out_shape=jax.ShapeDtypeStruct((B, S_q, D_p), jnp.float32),
        grid_spec=pltpu.PrefetchScalarGridSpec(
            num_scalar_prefetch=0,
            grid=(B // b_tile,),
            in_specs=in_specs,
            out_specs=pl.BlockSpec((b_tile, S_q, D_p), lambda b: (b, 0, 0)),
        ),
        compiler_params=pltpu.CompilerParams(
            dimension_semantics=("parallel",),   # megacore split over batch tiles
        ),
    )(q_p, k_p, v_p, *weights)

    return out_p[..., :D] if D_p != D else out_p


# ---------------- pure-JAX reference for validation ----------------
def mha_ref(q, k, v, params, *, num_heads, mask=False):
    dim_q = params["wq"].shape[1] // num_heads
    dim_v = params["wv"].shape[1] // num_heads
    Q = q @ params["wq"] + params["bq"]
    K = k @ params["wk"] + params["bk"]
    V = v @ params["wv"] + params["bv"]
    B, S_q, _ = Q.shape
    S_k = K.shape[1]
    Qh = Q.reshape(B, S_q, num_heads, dim_q)
    Kh = K.reshape(B, S_k, num_heads, dim_q)
    Vh = V.reshape(B, S_k, num_heads, dim_v)
    s = jnp.einsum("bqhd,bkhd->bhqk", Qh, Kh) / math.sqrt(dim_q)
    if mask:
        qi = jnp.arange(S_q)[:, None]
        ki = jnp.arange(S_k)[None, :]
        s = jnp.where((ki > qi)[None, None], -jnp.inf, s)
    p = jax.nn.softmax(s, axis=-1)
    ctx = jnp.einsum("bhqk,bkhd->bqhd", p, Vh).reshape(B, S_q, num_heads * dim_v)
    return ctx @ params["wo"] + params["bo"]


def init_params(key, dim_in, dim_q, dim_v, num_heads):
    ks = jax.random.split(key, 8)

    def w(k_, shape, scale=0.05):
        return (scale * jax.random.normal(k_, shape)).astype(jnp.float32)

    return {
        "wq": w(ks[0], (dim_in, num_heads * dim_q)),
        "bq": w(ks[1], (1, num_heads * dim_q)),
        "wk": w(ks[2], (dim_in, num_heads * dim_q)),
        "bk": w(ks[3], (1, num_heads * dim_q)),
        "wv": w(ks[4], (dim_in, num_heads * dim_v)),
        "bv": w(ks[5], (1, num_heads * dim_v)),
        "wo": w(ks[6], (num_heads * dim_v, dim_in)),   # nn.Linear(H*dim_q, dim_in)
        "bo": w(ks[7], (1, dim_in)),
    }


if __name__ == "__main__":
    key = jax.random.PRNGKey(0)
    kq, kk, kv, kp, kp2, kq2, kk2, kv2 = jax.random.split(key, 8)

    # Config 1: lane-dense model dim (D=128), 4 heads of 32, batch 2 processed
    # in a single grid step (B*S=16 rows folded into the matmul M dimension).
    B, S, D, H = 2, 8, 128, 4
    q_in = jax.random.normal(kq, (B, S, D), dtype=jnp.float32)
    k_in = jax.random.normal(kk, (B, S, D), dtype=jnp.float32)
    v_in = jax.random.normal(kv, (B, S, D), dtype=jnp.float32)
    params = init_params(kp, D, D // H, D // H, H)

    out = jax.block_until_ready(
        multi_head_attention(q_in, k_in, v_in, params, num_heads=H))
    ref = mha_ref(q_in, k_in, v_in, params, num_heads=H)
    assert out.shape == (B, S, D)
    assert jnp.allclose(out, ref, atol=3e-2, rtol=3e-2), "config-1 mismatch vs JAX reference"

    # Config 2: small D (<128) with the causal-mask path enabled; the wrapper
    # zero-pads D/H*dq/H*dv to 128 so all kernel tensors stay lane-dense.
    B2, S2, D2, H2 = 2, 8, 32, 4
    q2 = jax.random.normal(kq2, (B2, S2, D2), dtype=jnp.float32)
    k2 = jax.random.normal(kk2, (B2, S2, D2), dtype=jnp.float32)
    v2 = jax.random.normal(kv2, (B2, S2, D2), dtype=jnp.float32)
    params2 = init_params(kp2, D2, D2 // H2, D2 // H2, H2)
    out2 = jax.block_until_ready(
        multi_head_attention(q2, k2, v2, params2, num_heads=H2, mask=True))
    ref2 = mha_ref(q2, k2, v2, params2, num_heads=H2, mask=True)
    assert out2.shape == (B2, S2, D2)
    assert jnp.allclose(out2, ref2, atol=3e-2, rtol=3e-2), "config-2 mismatch vs JAX reference"

    print("KERNEL_OK")
</pallas_src>

<mosaic_0001>
module attributes {stable_mosaic.version = 11 : i64} {
  func.func @_mha_kernel(%arg0: i32, %arg1: memref<2x8x128xf32, #tpu.memory_space<vmem>>, %arg2: memref<2x8x128xf32, #tpu.memory_space<vmem>>, %arg3: memref<2x8x128xf32, #tpu.memory_space<vmem>>, %arg4: memref<128x128xbf16, #tpu.memory_space<vmem>>, %arg5: memref<1x128xf32, #tpu.memory_space<vmem>>, %arg6: memref<128x128xbf16, #tpu.memory_space<vmem>>, %arg7: memref<1x128xf32, #tpu.memory_space<vmem>>, %arg8: memref<128x128xbf16, #tpu.memory_space<vmem>>, %arg9: memref<1x128xf32, #tpu.memory_space<vmem>>, %arg10: memref<128x128xbf16, #tpu.memory_space<vmem>>, %arg11: memref<1x128xf32, #tpu.memory_space<vmem>>, %arg12: memref<2x8x128xf32, #tpu.memory_space<vmem>>) attributes {dimension_semantics = [#tpu.dimension_semantics<parallel>], iteration_bounds = array<i64: 1>, scalar_prefetch = 0 : i64, scratch_operands = 0 : i64, tpu.core_type = #tpu.core_type<tc>, window_params = [{transform_indices = @transform_0, window_bounds = array<i64: 2, 8, 128>}, {transform_indices = @transform_1, window_bounds = array<i64: 2, 8, 128>}, {transform_indices = @transform_2, window_bounds = array<i64: 2, 8, 128>}, {pipeline_mode = #tpu.pipeline_mode<synchronous>, transform_indices = @transform_3, window_bounds = array<i64: 128, 128>}, {pipeline_mode = #tpu.pipeline_mode<synchronous>, transform_indices = @transform_4, window_bounds = array<i64: 1, 128>}, {pipeline_mode = #tpu.pipeline_mode<synchronous>, transform_indices = @transform_5, window_bounds = array<i64: 128, 128>}, {pipeline_mode = #tpu.pipeline_mode<synchronous>, transform_indices = @transform_6, window_bounds = array<i64: 1, 128>}, {pipeline_mode = #tpu.pipeline_mode<synchronous>, transform_indices = @transform_7, window_bounds = array<i64: 128, 128>}, {pipeline_mode = #tpu.pipeline_mode<synchronous>, transform_indices = @transform_8, window_bounds = array<i64: 1, 128>}, {pipeline_mode = #tpu.pipeline_mode<synchronous>, transform_indices = @transform_9, window_bounds = array<i64: 128, 128>}, {pipeline_mode = #tpu.pipeline_mode<synchronous>, transform_indices = @transform_10, window_bounds = array<i64: 1, 128>}, {transform_indices = @transform_11, window_bounds = array<i64: 2, 8, 128>}]} {
    %c0 = arith.constant 0 : index
    %c0_0 = arith.constant 0 : index
    %c0_1 = arith.constant 0 : index
    %0 = vector.load %arg1[%c0, %c0_0, %c0_1] : memref<2x8x128xf32, #tpu.memory_space<vmem>>, vector<2x8x128xf32>
    %1 = vector.shape_cast %0 : vector<2x8x128xf32> to vector<16x128xf32>
    %c0_2 = arith.constant 0 : index
    %c0_3 = arith.constant 0 : index
    %c0_4 = arith.constant 0 : index
    %2 = vector.load %arg2[%c0_2, %c0_3, %c0_4] : memref<2x8x128xf32, #tpu.memory_space<vmem>>, vector<2x8x128xf32>
    %3 = vector.shape_cast %2 : vector<2x8x128xf32> to vector<16x128xf32>
    %c0_5 = arith.constant 0 : index
    %c0_6 = arith.constant 0 : index
    %c0_7 = arith.constant 0 : index
    %4 = vector.load %arg3[%c0_5, %c0_6, %c0_7] : memref<2x8x128xf32, #tpu.memory_space<vmem>>, vector<2x8x128xf32>
    %5 = vector.shape_cast %4 : vector<2x8x128xf32> to vector<16x128xf32>
    %6 = arith.truncf %1 : vector<16x128xf32> to vector<16x128xbf16>
    %c0_8 = arith.constant 0 : index
    %c0_9 = arith.constant 0 : index
    %7 = vector.load %arg4[%c0_8, %c0_9] : memref<128x128xbf16, #tpu.memory_space<vmem>>, vector<128x128xbf16>
    %cst = arith.constant dense<0.000000e+00> : vector<16x128xf32>
    %8 = tpu.matmul %6, %7, %cst {dimension_numbers = #tpu.dot_dimension_numbers<[1], [0], [0], [1], [0, 0, 1, 1], [], []>} : vector<16x128xbf16>, vector<128x128xbf16>, vector<16x128xf32> -> vector<16x128xf32>
    %c0_10 = arith.constant 0 : index
    %c0_11 = arith.constant 0 : index
    %9 = vector.load %arg5[%c0_10, %c0_11] : memref<1x128xf32, #tpu.memory_space<vmem>>, vector<1x128xf32>
    %10 = vector.broadcast %9 : vector<1x128xf32> to vector<16x128xf32>
    %11 = arith.addf %8, %10 : vector<16x128xf32>
    %12 = arith.truncf %3 : vector<16x128xf32> to vector<16x128xbf16>
    %c0_12 = arith.constant 0 : index
    %c0_13 = arith.constant 0 : index
    %13 = vector.load %arg6[%c0_12, %c0_13] : memref<128x128xbf16, #tpu.memory_space<vmem>>, vector<128x128xbf16>
    %cst_14 = arith.constant dense<0.000000e+00> : vector<16x128xf32>
    %14 = tpu.matmul %12, %13, %cst_14 {dimension_numbers = #tpu.dot_dimension_numbers<[1], [0], [0], [1], [0, 0, 1, 1], [], []>} : vector<16x128xbf16>, vector<128x128xbf16>, vector<16x128xf32> -> vector<16x128xf32>
    %c0_15 = arith.constant 0 : index
    %c0_16 = arith.constant 0 : index
    %15 = vector.load %arg7[%c0_15, %c0_16] : memref<1x128xf32, #tpu.memory_space<vmem>>, vector<1x128xf32>
    %16 = vector.broadcast %15 : vector<1x128xf32> to vector<16x128xf32>
    %17 = arith.addf %14, %16 : vector<16x128xf32>
    %18 = arith.truncf %5 : vector<16x128xf32> to vector<16x128xbf16>
    %c0_17 = arith.constant 0 : index
    %c0_18 = arith.constant 0 : index
    %19 = vector.load %arg8[%c0_17, %c0_18] : memref<128x128xbf16, #tpu.memory_space<vmem>>, vector<128x128xbf16>
    %cst_19 = arith.constant dense<0.000000e+00> : vector<16x128xf32>
    %20 = tpu.matmul %18, %19, %cst_19 {dimension_numbers = #tpu.dot_dimension_numbers<[1], [0], [0], [1], [0, 0, 1, 1], [], []>} : vector<16x128xbf16>, vector<128x128xbf16>, vector<16x128xf32> -> vector<16x128xf32>
    %c0_20 = arith.constant 0 : index
    %c0_21 = arith.constant 0 : index
    %21 = vector.load %arg9[%c0_20, %c0_21] : memref<1x128xf32, #tpu.memory_space<vmem>>, vector<1x128xf32>
    %22 = vector.broadcast %21 : vector<1x128xf32> to vector<16x128xf32>
    %23 = arith.addf %20, %22 : vector<16x128xf32>
    %24 = vector.shape_cast %11 : vector<16x128xf32> to vector<16x4x32xf32>
    %25 = tpu.transpose %24, [1, 0, 2] : vector<16x4x32xf32> -> vector<4x16x32xf32>
    %26 = vector.shape_cast %25 : vector<4x16x32xf32> to vector<8x8x32xf32>
    %27 = vector.shape_cast %17 : vector<16x128xf32> to vector<16x4x32xf32>
    %28 = tpu.transpose %27, [1, 0, 2] : vector<16x4x32xf32> -> vector<4x16x32xf32>
    %29 = vector.shape_cast %28 : vector<4x16x32xf32> to vector<8x8x32xf32>
    %30 = vector.shape_cast %23 : vector<16x128xf32> to vector<16x4x32xf32>
    %31 = tpu.transpose %30, [1, 0, 2] : vector<16x4x32xf32> -> vector<4x16x32xf32>
    %32 = vector.shape_cast %31 : vector<4x16x32xf32> to vector<8x8x32xf32>
    %33 = arith.truncf %26 : vector<8x8x32xf32> to vector<8x8x32xbf16>
    %34 = arith.truncf %29 : vector<8x8x32xf32> to vector<8x8x32xbf16>
    "tpu.trace_start"() <{level = 10 : i32, message = "gqd,gkd->gqk"}> : () -> ()
    %cst_22 = arith.constant dense<0.000000e+00> : vector<8x8x8xf32>
    %35 = tpu.matmul %33, %34, %cst_22 {dimension_numbers = #tpu.dot_dimension_numbers<[2], [2], [1], [1], [0, 0, 0, 1, 1, 1], [0], [0]>} : vector<8x8x32xbf16>, vector<8x8x32xbf16>, vector<8x8x8xf32> -> vector<8x8x8xf32>
    "tpu.trace_stop"() : () -> ()
    %cst_23 = arith.constant dense<0xFF800000> : vector<8x8xf32>
    %36 = vector.multi_reduction <maximumf>, %35, %cst_23 [2] : vector<8x8x8xf32> to vector<8x8xf32>
    %37 = vector.shape_cast %36 : vector<8x8xf32> to vector<8x8x1xf32>
    %38 = vector.broadcast %37 : vector<8x8x1xf32> to vector<8x8x8xf32>
    %39 = arith.subf %35, %38 : vector<8x8x8xf32>
    %40 = math.exp %39 : vector<8x8x8xf32>
    %cst_24 = arith.constant dense<0.000000e+00> : vector<8x8xf32>
    %41 = vector.multi_reduction <add>, %40, %cst_24 [2] : vector<8x8x8xf32> to vector<8x8xf32>
    %42 = vector.shape_cast %41 : vector<8x8xf32> to vector<8x8x1xf32>
    %43 = tpu.reciprocal %42 {approx = true} : vector<8x8x1xf32> -> vector<8x8x1xf32>
    %44 = vector.broadcast %43 : vector<8x8x1xf32> to vector<8x8x8xf32>
    %45 = arith.mulf %40, %44 : vector<8x8x8xf32>
    %46 = arith.truncf %45 : vector<8x8x8xf32> to vector<8x8x8xbf16>
    %47 = arith.truncf %32 : vector<8x8x32xf32> to vector<8x8x32xbf16>
    "tpu.trace_start"() <{level = 10 : i32, message = "gqk,gkd->gqd"}> : () -> ()
    %cst_25 = arith.constant dense<0.000000e+00> : vector<8x8x32xf32>
    %48 = tpu.matmul %46, %47, %cst_25 {dimension_numbers = #tpu.dot_dimension_numbers<[2], [1], [1], [2], [0, 0, 0, 1, 1, 2], [0], [0]>} : vector<8x8x8xbf16>, vector<8x8x32xbf16>, vector<8x8x32xf32> -> vector<8x8x32xf32>
    "tpu.trace_stop"() : () -> ()
    %49 = vector.shape_cast %48 : vector<8x8x32xf32> to vector<4x16x32xf32>
    %50 = tpu.transpose %49, [1, 0, 2] : vector<4x16x32xf32> -> vector<16x4x32xf32>
    %51 = vector.shape_cast %50 : vector<16x4x32xf32> to vector<16x128xf32>
    %52 = arith.truncf %51 : vector<16x128xf32> to vector<16x128xbf16>
    %c0_26 = arith.constant 0 : index
    %c0_27 = arith.constant 0 : index
    %53 = vector.load %arg10[%c0_26, %c0_27] : memref<128x128xbf16, #tpu.memory_space<vmem>>, vector<128x128xbf16>
    %cst_28 = arith.constant dense<0.000000e+00> : vector<16x128xf32>
    %54 = tpu.matmul %52, %53, %cst_28 {dimension_numbers = #tpu.dot_dimension_numbers<[1], [0], [0], [1], [0, 0, 1, 1], [], []>} : vector<16x128xbf16>, vector<128x128xbf16>, vector<16x128xf32> -> vector<16x128xf32>
    %c0_29 = arith.constant 0 : index
    %c0_30 = arith.constant 0 : index
    %55 = vector.load %arg11[%c0_29, %c0_30] : memref<1x128xf32, #tpu.memory_space<vmem>>, vector<1x128xf32>
    %56 = vector.broadcast %55 : vector<1x128xf32> to vector<16x128xf32>
    %57 = arith.addf %54, %56 : vector<16x128xf32>
    %58 = vector.shape_cast %57 : vector<16x128xf32> to vector<2x8x128xf32>
    %c0_31 = arith.constant 0 : index
    %c0_32 = arith.constant 0 : index
    %c0_33 = arith.constant 0 : index
    %59 = vector.load %arg12[%c0_31, %c0_32, %c0_33] : memref<2x8x128xf32, #tpu.memory_space<vmem>>, vector<2x8x128xf32>
    tpu.vector_store %arg12[%c0_31, %c0_32, %c0_33], %58 {strides = array<i32>} : memref<2x8x128xf32, #tpu.memory_space<vmem>>, vector<2x8x128xf32>,
    return
  }
  func.func @transform_0(%arg0: i32) -> (i32, i32, i32) {
    %c0_i32 = arith.constant 0 : i32
    %c0_i32_0 = arith.constant 0 : i32
    %c0_i32_1 = arith.constant 0 : i32
    return %arg0, %c0_i32, %c0_i32_0 : i32, i32, i32
  }
  func.func @transform_1(%arg0: i32) -> (i32, i32, i32) {
    %c0_i32 = arith.constant 0 : i32
    %c0_i32_0 = arith.constant 0 : i32
    %c0_i32_1 = arith.constant 0 : i32
    return %arg0, %c0_i32, %c0_i32_0 : i32, i32, i32
  }
  func.func @transform_2(%arg0: i32) -> (i32, i32, i32) {
    %c0_i32 = arith.constant 0 : i32
    %c0_i32_0 = arith.constant 0 : i32
    %c0_i32_1 = arith.constant 0 : i32
    return %arg0, %c0_i32, %c0_i32_0 : i32, i32, i32
  }
  func.func @transform_3(%arg0: i32) -> (i32, i32) {
    %c0_i32 = arith.constant 0 : i32
    %c0_i32_0 = arith.constant 0 : i32
    %c0_i32_1 = arith.constant 0 : i32
    return %c0_i32, %c0_i32_0 : i32, i32
  }
  func.func @transform_4(%arg0: i32) -> (i32, i32) {
    %c0_i32 = arith.constant 0 : i32
    %c0_i32_0 = arith.constant 0 : i32
    %c0_i32_1 = arith.constant 0 : i32
    return %c0_i32, %c0_i32_0 : i32, i32
  }
  func.func @transform_5(%arg0: i32) -> (i32, i32) {
    %c0_i32 = arith.constant 0 : i32
    %c0_i32_0 = arith.constant 0 : i32
    %c0_i32_1 = arith.constant 0 : i32
    return %c0_i32, %c0_i32_0 : i32, i32
  }
  func.func @transform_6(%arg0: i32) -> (i32, i32) {
    %c0_i32 = arith.constant 0 : i32
    %c0_i32_0 = arith.constant 0 : i32
    %c0_i32_1 = arith.constant 0 : i32
    return %c0_i32, %c0_i32_0 : i32, i32
  }
  func.func @transform_7(%arg0: i32) -> (i32, i32) {
    %c0_i32 = arith.constant 0 : i32
    %c0_i32_0 = arith.constant 0 : i32
    %c0_i32_1 = arith.constant 0 : i32
    return %c0_i32, %c0_i32_0 : i32, i32
  }
  func.func @transform_8(%arg0: i32) -> (i32, i32) {
    %c0_i32 = arith.constant 0 : i32
    %c0_i32_0 = arith.constant 0 : i32
    %c0_i32_1 = arith.constant 0 : i32
    return %c0_i32, %c0_i32_0 : i32, i32
  }
  func.func @transform_9(%arg0: i32) -> (i32, i32) {
    %c0_i32 = arith.constant 0 : i32
    %c0_i32_0 = arith.constant 0 : i32
    %c0_i32_1 = arith.constant 0 : i32
    return %c0_i32, %c0_i32_0 : i32, i32
  }
  func.func @transform_10(%arg0: i32) -> (i32, i32) {
    %c0_i32 = arith.constant 0 : i32
    %c0_i32_0 = arith.constant 0 : i32
    %c0_i32_1 = arith.constant 0 : i32
    return %c0_i32, %c0_i32_0 : i32, i32
  }
  func.func @transform_11(%arg0: i32) -> (i32, i32, i32) {
    %c0_i32 = arith.constant 0 : i32
    %c0_i32_0 = arith.constant 0 : i32
    %c0_i32_1 = arith.constant 0 : i32
    return %arg0, %c0_i32, %c0_i32_0 : i32, i32, i32
  }
}

</mosaic_0001>

<bundles_post_ra>
// kernel: tpu_custom_call.1
= control target key start
LH: loop header
LB: loop body
LE: loop exit
PB: predicated region body
PF: predicated region fallthrough
CT: control target
= control target key end

     0   :  { %16 = vsyncpa [#allocation3], 0  ;;  %s3919_s0 = inlined_call_operand.hbm [shape: f32[2,8,128], index: 0, kind: input, shape index: {}]   ;;  %s3920_s1 = inlined_call_operand.hbm [shape: f32[2,8,128], index: 1, kind: input, shape index: {}]   ;;  %s3921_s2 = inlined_call_operand.hbm [shape: f32[2,8,128], index: 2, kind: input, shape index: {}]   ;;  %s3922_s3 = inlined_call_operand.hbm [shape: bf16[128,128], index: 3, kind: input, shape index: {}]   ;;  %s3923_s4 = inlined_call_operand.vmem [shape: f32[1,128], index: 4, kind: input, shape index: {}]   ;;  %s3924_s5 = inlined_call_operand.hbm [shape: bf16[128,128], index: 5, kind: input, shape index: {}]   ;;  %s3925_s6 = inlined_call_operand.vmem [shape: f32[1,128], index: 6, kind: input, shape index: {}]   ;;  %s3926_s7 = inlined_call_operand.hbm [shape: bf16[128,128], index: 7, kind: input, shape index: {}]   ;;  %s3927_s8 = inlined_call_operand.vmem [shape: f32[1,128], index: 8, kind: input, shape index: {}]   ;;  %s3928_s9 = inlined_call_operand.hbm [shape: bf16[128,128], index: 9, kind: input, shape index: {}]   ;;  %s3929_s10 = inlined_call_operand.vmem [shape: f32[1,128], index: 10, kind: input, shape index: {}]   ;;  %s3930_s11 = inlined_call_operand.hbm [shape: f32[2,8,128], index: 11, kind: output, shape index: {}]  }
   0x1   :  { %17 = vsyncpa [#allocation6], 0 }
   0x2   :  { %18 = vsyncpa [#allocation9], 0 }
   0x3   :  { %19 = vsyncpa [#allocation12], 0 }
   0x4   :  { %20 = vsyncpa [#allocation4], 0  ;;  %s3249_s17 = smov [#allocation5]   ;;  %s3250_s19 = smov [#allocation8]  }
   0x5   :  { %s38_s18 = sshll.u32 %s3249_s17, 4  ;;  %s62_s20 = sshll.u32 %s3250_s19, 4  ;;  %s39_s18 = int_to_ptr.vmem [resolvable:$true] %s38_s18  ;;  %s3327_s20 = int_to_ptr.vmem [resolvable:$true] %s62_s20 }
   0x6   :  { %s3063_s23 = scalar_lea.hbm %s3920_s1, 256 }
   0x7   :  { %p3064_p0 = scmp.ne.s32.totalorder %s3920_s1, %s3063_s23  ;;  %p3067_p1 = scmp.lt.u32.totalorder %s3063_s23, %s3920_s1 }
   0x9   :  { %p3069_p2 = pnand %p3067_p1, %p3064_p0 }
   0xb   :  { %3072 = shalt.err (!%p3069_p2)
}
   0xc   :  { %s3073_s28 = scalar_lea.vmem %s39_s18, 256  ;;  %p3078_p4 = scmp.lt.s32.totalorder %s39_s18, %s39_s18 }
   0xd   :  { %p3074_p3 = scmp.ne.s32.totalorder %s39_s18, %s3073_s28  ;;  %p3079_p5 = scmp.lt.s32.totalorder %s3073_s28, %s3073_s28 }
   0xf   :  { %p3080_p6 = por %p3079_p5, %p3078_p4 }
  0x11   :  { %p3081_p7 = pnand %p3080_p6, %p3074_p3 }
  0x13   :  { %3084 = shalt.err (!%p3081_p7)
}
  0x14   :  { %s3251_s29 = smov 128   ;;  %s3252_s30 = smov 8  }
  0x15   :  { %44 = dma.hbm_to_vmem [thread:$0]  %s3920_s1, 256, %s39_s18, [#allocation6], %s3251_s29, %s3251_s29, %s3252_s30  }
  0x16   :  { %s3085_s16 = scalar_lea.hbm %s3922_s3, 1024 }
  0x17   :  { %p3086_p8 = scmp.ne.s32.totalorder %s3922_s3, %s3085_s16  ;;  %p3089_p9 = scmp.lt.u32.totalorder %s3085_s16, %s3922_s3 }
  0x19   :  { %p3091_p10 = pnand %p3089_p9, %p3086_p8 }
  0x1b   :  { %3094 = shalt.err (!%p3091_p10)
}
  0x1c   :  { %s3095_s23 = scalar_lea.vmem %s3327_s20, 1024  ;;  %p3100_p12 = scmp.lt.s32.totalorder %s3327_s20, %s3327_s20 }
  0x1d   :  { %p3096_p11 = scmp.ne.s32.totalorder %s3327_s20, %s3095_s23  ;;  %p3101_p13 = scmp.lt.s32.totalorder %s3095_s23, %s3095_s23 }
  0x1f   :  { %p3102_p0 = por %p3101_p13, %p3100_p12 }
  0x21   :  { %p3103_p1 = pnand %p3102_p0, %p3096_p11 }
  0x23   :  { %3106 = shalt.err (!%p3103_p1)
}
  0x24   :  { %s3253_s1 = smov 64   ;;  %s3254_s18 = smov 4  }
  0x25   :  { %68 = dma.hbm_to_vmem [thread:$0]  %s3922_s3, 1024, %s3327_s20, [#allocation9], %s3253_s1, %s3253_s1, %s3254_s18  }
  0x26   :  { %s3255_s26 = smov [#allocation11]   ;;  %s3256_s28 = smov [#allocation2]  }
  0x27   :  { %s90_s27 = sshll.u32 %s3255_s26, 4  ;;  %s26_s12 = sshll.u32 %s3256_s28, 4  ;;  %s91_s27 = int_to_ptr.vmem [resolvable:$true] %s90_s27  ;;  %s3364_s12 = int_to_ptr.vmem [resolvable:$true] %s26_s12 }
  0x28   :  { %s3107_s15 = scalar_lea.hbm %s3926_s7, 1024 }
  0x29   :  { %p3108_p2 = scmp.ne.s32.totalorder %s3926_s7, %s3107_s15  ;;  %p3111_p3 = scmp.lt.u32.totalorder %s3107_s15, %s3926_s7 }
  0x2b   :  { %p3113_p4 = pnand %p3111_p3, %p3108_p2 }
  0x2d   :  { %3116 = shalt.err (!%p3113_p4)
}
  0x2e   :  { %s3117_s3 = scalar_lea.vmem %s91_s27, 1024  ;;  %p3122_p6 = scmp.lt.s32.totalorder %s91_s27, %s91_s27 }
  0x2f   :  { %p3118_p5 = scmp.ne.s32.totalorder %s91_s27, %s3117_s3  ;;  %p3123_p7 = scmp.lt.s32.totalorder %s3117_s3, %s3117_s3 }
  0x31   :  { %p3124_p8 = por %p3123_p7, %p3122_p6 }
  0x33   :  { %p3125_p9 = pnand %p3124_p8, %p3118_p5 }
  0x35   :  { %3128 = shalt.err (!%p3125_p9)
}
  0x36   :  { %96 = dma.hbm_to_vmem [thread:$0]  %s3926_s7, 1024, %s91_s27, [#allocation12], %s3253_s1, %s3253_s1, %s3254_s18  }
  0x37   :  { %s3129_s25 = scalar_lea.hbm %s3919_s0, 256 }
  0x38   :  { %p3130_p10 = scmp.ne.s32.totalorder %s3919_s0, %s3129_s25  ;;  %p3133_p11 = scmp.lt.u32.totalorder %s3129_s25, %s3919_s0 }
  0x3a   :  { %p3135_p12 = pnand %p3133_p11, %p3130_p10 }
  0x3c   :  { %3138 = shalt.err (!%p3135_p12)
}
  0x3d   :  { %s3139_s15 = scalar_lea.vmem %s3364_s12, 256  ;;  %p3144_p0 = scmp.lt.s32.totalorder %s3364_s12, %s3364_s12 }
  0x3e   :  { %p3140_p13 = scmp.ne.s32.totalorder %s3364_s12, %s3139_s15  ;;  %p3145_p1 = scmp.lt.s32.totalorder %s3139_s15, %s3139_s15 }
  0x40   :  { %p3146_p2 = por %p3145_p1, %p3144_p0 }
  0x42   :  { %p3147_p3 = pnand %p3146_p2, %p3140_p13 }
  0x44   :  { %3150 = shalt.err (!%p3147_p3)
}
  0x45   :  { %32 = dma.hbm_to_vmem [thread:$0]  %s3919_s0, 256, %s3364_s12, [#allocation3], %s3251_s29, %s3251_s29, %s3252_s30  }
  0x46   :  { %s3257_s16 = smov [#allocation7]   ;;  %s3258_s19 = smov [#allocation10]  }
  0x47   :  { %s50_s17 = sshll.u32 %s3257_s16, 4  ;;  %s76_s21 = sshll.u32 %s3258_s19, 4  ;;  %s51_s17 = int_to_ptr.vmem [resolvable:$true] %s50_s17  ;;  %s3401_s21 = int_to_ptr.vmem [resolvable:$true] %s76_s21 }
  0x48   :  { %s3151_s22 = scalar_lea.hbm %s3921_s2, 256 }
  0x49   :  { %p3152_p4 = scmp.ne.s32.totalorder %s3921_s2, %s3151_s22  ;;  %p3155_p5 = scmp.lt.u32.totalorder %s3151_s22, %s3921_s2 }
  0x4b   :  { %p3157_p6 = pnand %p3155_p5, %p3152_p4 }
  0x4d   :  { %3160 = shalt.err (!%p3157_p6)
}
  0x4e   :  { %s3161_s0 = scalar_lea.vmem %s51_s17, 256  ;;  %p3166_p8 = scmp.lt.s32.totalorder %s51_s17, %s51_s17 }
  0x4f   :  { %p3162_p7 = scmp.ne.s32.totalorder %s51_s17, %s3161_s0  ;;  %p3167_p9 = scmp.lt.s32.totalorder %s3161_s0, %s3161_s0 }
  0x51   :  { %p3168_p10 = por %p3167_p9, %p3166_p8 }
  0x53   :  { %p3169_p11 = pnand %p3168_p10, %p3162_p7 }
  0x55   :  { %3172 = shalt.err (!%p3169_p11)
}
  0x56   :  { %56 = dma.hbm_to_vmem [thread:$0]  %s3921_s2, 256, %s51_s17, [#allocation6], %s3251_s29, %s3251_s29, %s3252_s30  }
  0x57   :  { %s3173_s15 = scalar_lea.hbm %s3924_s5, 1024 }
  0x58   :  { %p3174_p12 = scmp.ne.s32.totalorder %s3924_s5, %s3173_s15  ;;  %p3177_p13 = scmp.lt.u32.totalorder %s3173_s15, %s3924_s5 }
  0x5a   :  { %p3179_p0 = pnand %p3177_p13, %p3174_p12 }
  0x5c   :  { %3182 = shalt.err (!%p3179_p0)
}
  0x5d   :  { %s3183_s3 = scalar_lea.vmem %s3401_s21, 1024  ;;  %p3188_p2 = scmp.lt.s32.totalorder %s3401_s21, %s3401_s21 }
  0x5e   :  { %p3184_p1 = scmp.ne.s32.totalorder %s3401_s21, %s3183_s3  ;;  %p3189_p3 = scmp.lt.s32.totalorder %s3183_s3, %s3183_s3 }
  0x60   :  { %p3190_p4 = por %p3189_p3, %p3188_p2 }
  0x62   :  { %p3191_p5 = pnand %p3190_p4, %p3184_p1 }
  0x64   :  { %3194 = shalt.err (!%p3191_p5)
}
  0x65   :  { %82 = dma.hbm_to_vmem [thread:$0]  %s3924_s5, 1024, %s3401_s21, [#allocation9], %s3253_s1, %s3253_s1, %s3254_s18  }
  0x66   :  { %s3259_s20 = smov [#allocation13]   ;;  %s3195_s25 = scalar_lea.hbm %s3928_s9, 1024 }
  0x67   :  { %s104_s22 = sshll.u32 %s3259_s20, 4  ;;  %p3196_p6 = scmp.ne.s32.totalorder %s3928_s9, %s3195_s25  ;;  %s105_s22 = int_to_ptr.vmem [resolvable:$true] %s104_s22 }
  0x68   :  { %p3199_p7 = scmp.lt.u32.totalorder %s3195_s25, %s3928_s9 }
  0x6a   :  { %p3201_p8 = pnand %p3199_p7, %p3196_p6 }
  0x6c   :  { %3204 = shalt.err (!%p3201_p8)
}
  0x6d   :  { %s3205_s13 = scalar_lea.vmem %s105_s22, 1024  ;;  %p3210_p10 = scmp.lt.s32.totalorder %s105_s22, %s105_s22 }
  0x6e   :  { %p3206_p9 = scmp.ne.s32.totalorder %s105_s22, %s3205_s13  ;;  %p3211_p11 = scmp.lt.s32.totalorder %s3205_s13, %s3205_s13 }
  0x70   :  { %p3212_p12 = por %p3211_p11, %p3210_p10 }
  0x72   :  { %p3213_p13 = pnand %p3212_p12, %p3206_p9 }
  0x74   :  { %3216 = shalt.err (!%p3213_p13)
}
  0x75   :  { %110 = dma.hbm_to_vmem [thread:$0]  %s3928_s9, 1024, %s105_s22, [#allocation12], %s3253_s1, %s3253_s1, %s3254_s18  }
  0x76   :  { %3239 = dma.done.wait [#allocation3], 256  }
  0x77   :  { %3240 = vsyncadd [#allocation3], 4294967040 }
  0x78   :  { %3241 = dma.done.wait [#allocation6], 512  }
  0x79   :  { %3242 = vsyncadd [#allocation6], 4294966784 }
  0x7a   :  { %3243 = dma.done.wait [#allocation9], 2048  }
  0x7b   :  { %3244 = vsyncadd [#allocation9], 4294965248 }
  0x7c   :  { %3245 = dma.done.wait [#allocation12], 2048  }
  0x7d   :  { %3246 = vsyncadd [#allocation12], 4294965248  ;;  %v3260_v0 = vmov 0.0   ;;  %vm3261_vm0 = vmmov 0   ;;  %v2999_v1 = vld [vmem:[#allocation10] sm:$0xff]   ;;  %v3001_v3 = vld [vmem:[#allocation10 + $0x8] sm:$0xff]   ;;  %v505_v50 = vlaneseq }
  0x7e   :  { %2810 = vmatprep.subr.bf16.mxu1 %v3260_v0  ;;  %2790 = vmatprep.subr.bf16.mxu0 %v3260_v0  ;;  %v3000_v2 = vld [vmem:[#allocation8] sm:$0xff]   ;;  %v3002_v4 = vld [vmem:[#allocation8 + $0x8] sm:$0xff]   ;;  %v3003_v5 = vld [vmem:[#allocation10 + $0x10] sm:$0xff]   ;;  %s3262_s7 = smov 32   ;;  %s3263_s27 = smov 96   ;;  %vm1372_vm1 = vcmask 261120  }
  0x7f   :  { %2826 = vmatprep.mubr.msk.bf16.mxu1 %vm3261_vm0, %v3260_v0  ;;  %2806 = vmatprep.mubr.msk.bf16.mxu0 %vm3261_vm0, %v3260_v0  ;;  %v3004_v6 = vld [vmem:[#allocation8 + $0x10] sm:$0xff]   ;;  %v3005_v7 = vld [vmem:[#allocation10 + $0x18] sm:$0xff]   ;;  %v3007_v9 = vld [vmem:[#allocation10 + $0x20] sm:$0xff]   ;;  %v3264_v48 = vmov 1983009808   ;;  %v506_v54 = vshrl.u32 %v505_v50, 7 }
  0x80   :  { %2811 = vmatpush3.bf16.msra.mxu1 %v2999_v1  ;;  %2791 = vmatpush3.bf16.msra.mxu0 %v3000_v2  ;;  %v3006_v8 = vld [vmem:[#allocation8 + $0x18] sm:$0xff]   ;;  %v3008_v10 = vld [vmem:[#allocation8 + $0x20] sm:$0xff]   ;;  %v3009_v11 = vld [vmem:[#allocation10 + $0x28] sm:$0xff]   ;;  %v503_v49 = vunpack.c.l.s4 %v3264_v48  ;;  %v3265_v51 = vmov 1934713408   ;;  %vm1741_vm2 = vcmask 64512  }
  0x81   :  { %2812 = vmatprep.subr.bf16.mxu1 %v3260_v0  ;;  %2792 = vmatprep.subr.bf16.mxu0 %v3260_v0  ;;  %v3010_v12 = vld [vmem:[#allocation8 + $0x28] sm:$0xff]   ;;  %v3011_v13 = vld [vmem:[#allocation10 + $0x30] sm:$0xff]   ;;  %v3013_v15 = vld [vmem:[#allocation10 + $0x38] sm:$0xff]   ;;  %v535_v52 = vunpack.c.l.s4 %v3265_v51  ;;  %vm1849_vm3 = vcmask 1043456   ;;  %vm2513_vm4 = vcmask 523264   ;;  %vm2516_vm5 = vcmask 785408  }
  0x82   :  { %v3012_v14 = vld [vmem:[#allocation8 + $0x30] sm:$0xff]   ;;  %v137_v16 = vld [vmem:[#allocation5] sm:$0xff]  ;;  %v138_v17 = vld [vmem:[#allocation5 + $0x8] sm:$0xff]  ;;  %v504_v53 = vunpack.c.0.s8 %v503_v49  ;;  %s3266_s16 = smov [#allocation14]  }
  0x83   :  { %v3014_v18 = vld [vmem:[#allocation8 + $0x38] sm:$0xff]   ;;  %v135_v19 = vld [vmem:[#allocation2] sm:$0xff]  ;;  %v254_v21 = vpack.c.bf16 %v138_v17, %v137_v16  ;;  %v3015_v23 = vld [vmem:[#allocation11] sm:$0xff]   ;;  %v536_v57 = vunpack.c.0.s8 %v535_v52  ;;  %s2639_s19 = sshll.u32 %s3266_s16, 4  ;;  %s2640_s19 = int_to_ptr.vmem [resolvable:$true] %s2639_s19 }
  0x84   :  { %2813 = vmatpush3.bf16.msra.mxu1 %v3001_v3  ;;  %2793 = vmatpush3.bf16.msra.mxu0 %v3002_v4  ;;  %v136_v20 = vld [vmem:[#allocation2 + $0x8] sm:$0xff]  ;;  %v3016_v24 = vld [vmem:[#allocation11 + $0x8] sm:$0xff]   ;;  %v3017_v25 = vld [vmem:[#allocation11 + $0x10] sm:$0xff]   ;;  %v3517_v58 = vsub.s32 %v504_v53, %v506_v54  ;;  %s3217_s3 = scalar_lea.vmem %s2640_s19, 256  ;;  %p3222_p1 = scmp.lt.s32.totalorder %s2640_s19, %s2640_s19 }
  0x85   :  { %2814 = vmatprep.subr.bf16.mxu1 %v3260_v0  ;;  %2794 = vmatprep.subr.bf16.mxu0 %v3260_v0  ;;  %v141_v22 = vpack.c.bf16 %v136_v20, %v135_v19  ;;  %v3018_v26 = vld [vmem:[#allocation11 + $0x18] sm:$0xff]   ;;  %v3019_v27 = vld [vmem:[#allocation11 + $0x20] sm:$0xff]   ;;  %v3020_v28 = vld [vmem:[#allocation11 + $0x28] sm:$0xff]   ;;  %v3519_v2 = vsub.s32 %v536_v57, %v506_v54  ;;  %p3218_p0 = scmp.ne.s32.totalorder %s2640_s19, %s3217_s3  ;;  %p3223_p2 = scmp.lt.s32.totalorder %s3217_s3, %s3217_s3 }
  0x86   :  { %v3021_v29 = vld [vmem:[#allocation11 + $0x30] sm:$0xff]   ;;  %v3022_v30 = vld [vmem:[#allocation11 + $0x38] sm:$0xff]  }
  0x87   :  { %v139_v31 = vld [vmem:[#allocation7] sm:$0xff]  ;;  %v140_v32 = vld [vmem:[#allocation7 + $0x8] sm:$0xff]  ;;  %p3224_p3 = por %p3223_p2, %p3222_p1 }
  0x88   :  { %2815 = vmatpush3.bf16.msra.mxu1 %v3003_v5  ;;  %2795 = vmatpush3.bf16.msra.mxu0 %v3004_v6  ;;  %v367_v33 = vpack.c.bf16 %v140_v32, %v139_v31  ;;  %v2663_v34 = vld [vmem:[%s3925_s6] ss:$0 sm:$0xff] }
  0x89   :  { %2816 = vmatprep.subr.bf16.mxu1 %v3260_v0  ;;  %2796 = vmatprep.subr.bf16.mxu0 %v3260_v0  ;;  %v2654_v36 = vld [vmem:[%s3923_s4] ss:$0 sm:$0xff]  ;;  %p3225_p4 = pnand %p3224_p3, %p3218_p0 }
  0x8c   :  { %2817 = vmatpush3.bf16.msra.mxu1 %v3005_v7  ;;  %2797 = vmatpush3.bf16.msra.mxu0 %v3006_v8 }
  0x8d   :  { %2818 = vmatprep.subr.bf16.mxu1 %v3260_v0  ;;  %2798 = vmatprep.subr.bf16.mxu0 %v3260_v0 }
  0x90   :  { %2819 = vmatpush3.bf16.msra.mxu1 %v3007_v9  ;;  %2799 = vmatpush3.bf16.msra.mxu0 %v3008_v10 }
  0x91   :  { %2820 = vmatprep.subr.bf16.mxu1 %v3260_v0  ;;  %2800 = vmatprep.subr.bf16.mxu0 %v3260_v0 }
  0x94   :  { %2821 = vmatpush3.bf16.msra.mxu1 %v3009_v11  ;;  %2801 = vmatpush3.bf16.msra.mxu0 %v3010_v12 }
  0x95   :  { %2822 = vmatprep.subr.bf16.mxu1 %v3260_v0  ;;  %2802 = vmatprep.subr.bf16.mxu0 %v3260_v0 }
  0x98   :  { %2823 = vmatpush3.bf16.msra.mxu1 %v3011_v13  ;;  %2803 = vmatpush3.bf16.msra.mxu0 %v3012_v14 }
  0x99   :  { %2824 = vmatprep.subr.bf16.mxu1 %v3260_v0  ;;  %2804 = vmatprep.subr.bf16.mxu0 %v3260_v0 }
  0x9c   :  { %2825 = vmatpush3.bf16.msra.mxu1 %v3013_v15  ;;  %2805 = vmatpush3.bf16.msra.mxu0 %v3014_v18 }
  0x9d   :  { %2850 = vmatprep.subr.bf16.mxu1 %v3260_v0  ;;  %2830 = vmatprep.subr.bf16.mxu0 %v3260_v0 }
  0x9f   :  { %2827 = vmatmul.mubr.bf16.vlgmr.msra.gmra.mrb[0].mxu1 %v254_v21  ;;  %2807 = vmatmul.mubr.bf16.vlgmr.msra.gmra.mrb[0].mxu0 %v141_v22 }
  0xa0   :  { %2852 = vmatprep.mubr.msk.bf16.mxu1 %vm3261_vm0, %v3260_v0  ;;  %2846 = vmatprep.mubr.msk.bf16.mxu0 %vm3261_vm0, %v3260_v0 }
  0xa1   :  { %2831 = vmatpush3.bf16.msra.mxu0 %v3015_v23 }
  0xa2   :  { %2832 = vmatprep.subr.bf16.mxu0 %v3260_v0 }
  0xa5   :  { %2833 = vmatpush3.bf16.msra.mxu0 %v3016_v24 }
  0xa6   :  { %2834 = vmatprep.subr.bf16.mxu0 %v3260_v0 }
  0xa9   :  { %2835 = vmatpush3.bf16.msra.mxu0 %v3017_v25 }
  0xaa   :  { %2836 = vmatprep.subr.bf16.mxu0 %v3260_v0 }
  0xad   :  { %2837 = vmatpush3.bf16.msra.mxu0 %v3018_v26 }
  0xae   :  { %2838 = vmatprep.subr.bf16.mxu0 %v3260_v0 }
  0xb1   :  { %2839 = vmatpush3.bf16.msra.mxu0 %v3019_v27 }
  0xb2   :  { %2840 = vmatprep.subr.bf16.mxu0 %v3260_v0 }
  0xb5   :  { %2841 = vmatpush3.bf16.msra.mxu0 %v3020_v28 }
  0xb6   :  { %2842 = vmatprep.subr.bf16.mxu0 %v3260_v0 }
  0xb9   :  { %2843 = vmatpush3.bf16.msra.mxu0 %v3021_v29 }
  0xba   :  { %2844 = vmatprep.subr.bf16.mxu0 %v3260_v0 }
  0xbd   :  { %2845 = vmatpush3.bf16.msra.mxu0 %v3022_v30 }
  0xbe   :  { %2898 = vmatprep.subr.bf16.mxu0 %v3260_v0 }
  0xc0   :  { %2847 = vmatmul.mubr.bf16.vlgmr.msra.gmra.mrb[4].mxu0 %v367_v33 }
  0xc1   :  { %2900 = vmatprep.mubr.msk.bf16.mxu0 %vm3261_vm0, %v3260_v0 }
 0x172   :  { %v360_v35 = vpop.f32.mrb[0].mxu1  ;;  %v247_v39 = vpop.f32.mrb[0].mxu0 }
 0x173   :  { %v361_v37 = vadd.f32 %v2663_v34, %v360_v35  ;;  %v2828_v38 = vpop.f32.mrb[1].mxu1  ;;  %v2808_v41 = vpop.f32.mrb[1].mxu0  ;;  %v248_v43 = vadd.f32 %v2654_v36, %v247_v39 }
 0x174   :  { %v363_v40 = vpop.f32.mrb[2].mxu1  ;;  %v250_v44 = vpop.f32.mrb[2].mxu0 }
 0x175   :  { %786 = vrot.lane.b32.xlu1 %v361_v37, %s3262_s7  ;;  %774 = vrot.lane.b32.xlu0 %v361_v37, %s3263_s27  ;;  %v2829_v42 = vpop.f32.mrb[3].mxu1  ;;  %v2809_v45 = vpop.f32.mrb[3].mxu0  ;;  %v3501_v46 = vadd.f32 %v2663_v34, %v363_v40  ;;  %v3507_v47 = vadd.f32 %v2654_v36, %v250_v44 }
 0x179   :  { %780 = vrot.lane.b32.xlu0 %v361_v37, %s3253_s1  ;;  %482 = vrot.lane.b32.xlu1 %v248_v43, %s3263_s27 }
 0x17d   :  { %488 = vrot.lane.b32.xlu0 %v248_v43, %s3253_s1  ;;  %494 = vrot.lane.b32.xlu1 %v248_v43, %s3262_s7 }
 0x181   :  { %776 = vrot.lane.b32.xlu0 %v3501_v46, %s3263_s27  ;;  %782 = vrot.lane.b32.xlu1 %v3501_v46, %s3253_s1 }
 0x185   :  { %788 = vrot.lane.b32.xlu0 %v3501_v46, %s3262_s7  ;;  %484 = vrot.lane.b32.xlu1 %v3507_v47, %s3263_s27 }
 0x189   :  { %490 = vrot.lane.b32.xlu0 %v3507_v47, %s3253_s1  ;;  %496 = vrot.lane.b32.xlu1 %v3507_v47, %s3262_s7 }
 0x1e7   :  { %v787_v55 = vpop.permute.xlu1 %786  ;;  %v775_v56 = vpop.permute.xlu0 %774 }
 0x1e8   :  { %v808_v59 = vcombine.low %v775_v56, %v787_v55  ;;  %v809_v60 = vcombine.high %v775_v56, %v787_v55 }
 0x1ea   :  { %v816_v3 = vrot.slane %v808_v59, %v3517_v58  ;;  %v823_v4 = vrot.slane %v809_v60, %v3517_v58 }
 0x1eb   :  { %v781_v61 = vpop.permute.xlu0 %780  ;;  %v483_v62 = vpop.permute.xlu1 %482 }
 0x1ec   :  { %v792_v63 = vcombine.low %v361_v37, %v781_v61  ;;  %v793_v1 = vcombine.high %v361_v37, %v781_v61 }
 0x1ee   :  { %v800_v5 = vrot.slane %v792_v63, %v3517_v58  ;;  %v807_v6 = vrot.slane %v793_v1, %v3517_v58 }
 0x1ef   :  { %v489_v7 = vpop.permute.xlu0 %488  ;;  %v495_v8 = vpop.permute.xlu1 %494 }
 0x1f0   :  { %v824_v9 = vcombine.low %v800_v5, %v816_v3  ;;  %v825_v10 = vcombine.high %v800_v5, %v816_v3  ;;  %v840_v11 = vcombine.low %v807_v6, %v823_v4  ;;  %v841_v12 = vcombine.high %v807_v6, %v823_v4 }
 0x1f1   :  { %v500_v13 = vcombine.low %v248_v43, %v489_v7  ;;  %v501_v14 = vcombine.high %v248_v43, %v489_v7  ;;  %v516_v15 = vcombine.low %v483_v62, %v495_v8  ;;  %v517_v16 = vcombine.high %v483_v62, %v495_v8 }
 0x1f2   :  { %v832_v17 = vrot.slane %v824_v9, %v3519_v2  ;;  %v839_v18 = vrot.slane %v825_v10, %v3519_v2  ;;  %v848_v19 = vrot.slane %v840_v11, %v3519_v2  ;;  %v855_v20 = vrot.slane %v841_v12, %v3519_v2 }
 0x1f3   :  { %v508_v21 = vrot.slane %v500_v13, %v3517_v58  ;;  %v515_v22 = vrot.slane %v501_v14, %v3517_v58  ;;  %v524_v23 = vrot.slane %v516_v15, %v3517_v58  ;;  %v531_v24 = vrot.slane %v517_v16, %v3517_v58  ;;  %v777_v25 = vpop.permute.xlu0 %776  ;;  %v783_v26 = vpop.permute.xlu1 %782 }
 0x1f4   :  { %v928_v31 = vcombine.low %v832_v17, %v839_v18  ;;  %v2685_v32 = vcombine.high %v832_v17, %v839_v18  ;;  %v944_v33 = vcombine.low %v848_v19, %v855_v20  ;;  %v2686_v34 = vcombine.high %v848_v19, %v855_v20 }
 0x1f5   :  { %v532_v27 = vcombine.low %v508_v21, %v524_v23  ;;  %v533_v28 = vcombine.high %v508_v21, %v524_v23  ;;  %v548_v29 = vcombine.low %v515_v22, %v531_v24  ;;  %v549_v30 = vcombine.high %v515_v22, %v531_v24 }
 0x1f6   :  { %v860_v41 = vcombine.low %v3501_v46, %v783_v26  ;;  %v861_v42 = vcombine.high %v3501_v46, %v783_v26  ;;  %v3544_v55 = vrot.slane %v928_v31, %v3517_v58  ;;  %v3547_v56 = vrot.slane %v2685_v32, %v3517_v58 }
 0x1f7   :  { %v540_v35 = vrot.slane %v532_v27, %v3519_v2  ;;  %v547_v36 = vrot.slane %v533_v28, %v3519_v2  ;;  %v556_v37 = vrot.slane %v548_v29, %v3519_v2  ;;  %v563_v38 = vrot.slane %v549_v30, %v3519_v2  ;;  %v789_v39 = vpop.permute.xlu0 %788  ;;  %v485_v40 = vpop.permute.xlu1 %484 }
 0x1f8   :  { %v876_v43 = vcombine.low %v777_v25, %v789_v39  ;;  %v877_v44 = vcombine.high %v777_v25, %v789_v39  ;;  %v868_v51 = vrot.slane %v860_v41, %v3517_v58  ;;  %v875_v52 = vrot.slane %v861_v42, %v3517_v58 }
 0x1f9   :  { %v636_v45 = vcombine.low %v540_v35, %v547_v36  ;;  %v2681_v48 = vcombine.high %v540_v35, %v547_v36  ;;  %v652_v49 = vcombine.low %v556_v37, %v563_v38  ;;  %v2682_v50 = vcombine.high %v556_v37, %v563_v38 }
 0x1fa   :  { %v884_v53 = vrot.slane %v876_v43, %v3517_v58  ;;  %v891_v54 = vrot.slane %v877_v44, %v3517_v58  ;;  %v3550_v46 = vrot.slane %v944_v33, %v3517_v58  ;;  %v3553_v57 = vrot.slane %v2686_v34, %v3517_v58 }
 0x1fb   :  { %v491_v63 = vpop.permute.xlu0 %490  ;;  %v497_v1 = vpop.permute.xlu1 %496  ;;  %v3556_v3 = vrot.slane %v636_v45, %v3517_v58  ;;  %v3559_v4 = vrot.slane %v2681_v48, %v3517_v58  ;;  %v3562_v5 = vrot.slane %v652_v49, %v3517_v58  ;;  %v3565_v6 = vrot.slane %v2682_v50, %v3517_v58 }
 0x1fc   :  { %v892_v59 = vcombine.low %v868_v51, %v884_v53  ;;  %v893_v60 = vcombine.high %v868_v51, %v884_v53  ;;  %v908_v61 = vcombine.low %v875_v52, %v891_v54  ;;  %v909_v62 = vcombine.high %v875_v52, %v891_v54 }
 0x1fd   :  { %v568_v11 = vcombine.low %v3507_v47, %v491_v63  ;;  %v569_v12 = vcombine.high %v3507_v47, %v491_v63  ;;  %v584_v13 = vcombine.low %v485_v40, %v497_v1  ;;  %v585_v14 = vcombine.high %v485_v40, %v497_v1 }
 0x1fe   :  { %v900_v7 = vrot.slane %v892_v59, %v3519_v2  ;;  %v907_v8 = vrot.slane %v893_v60, %v3519_v2  ;;  %v916_v9 = vrot.slane %v908_v61, %v3519_v2  ;;  %v923_v10 = vrot.slane %v909_v62, %v3519_v2 }
 0x1ff   :  { %v576_v19 = vrot.slane %v568_v11, %v3517_v58  ;;  %v583_v20 = vrot.slane %v569_v12, %v3517_v58  ;;  %v592_v21 = vrot.slane %v584_v13, %v3517_v58  ;;  %v599_v22 = vrot.slane %v585_v14, %v3517_v58 }
 0x200   :  { %v996_v15 = vcombine.low %v900_v7, %v907_v8  ;;  %v2687_v16 = vcombine.high %v900_v7, %v907_v8  ;;  %v1012_v17 = vcombine.low %v916_v9, %v923_v10  ;;  %v2688_v18 = vcombine.high %v916_v9, %v923_v10 }
 0x201   :  { %v668_v23 = vcombine.low %v3556_v3, %v3559_v4  ;;  %v684_v47 = vcombine.low %v3562_v5, %v3565_v6  ;;  %v600_v26 = vcombine.low %v576_v19, %v592_v21  ;;  %v601_v27 = vcombine.high %v576_v19, %v592_v21 }
 0x202   :  { %v3582_v24 = vrot.slane %v996_v15, %v3517_v58  ;;  %v3585_v25 = vrot.slane %v2687_v16, %v3517_v58  ;;  %v616_v28 = vcombine.low %v583_v20, %v599_v22  ;;  %v617_v29 = vcombine.high %v583_v20, %v599_v22 }
 0x203   :  { %v3588_v30 = vrot.slane %v1012_v17, %v3517_v58  ;;  %v3591_v31 = vrot.slane %v2688_v18, %v3517_v58  ;;  %v960_v32 = vcombine.low %v3544_v55, %v3547_v56  ;;  %v976_v33 = vcombine.low %v3550_v46, %v3553_v57 }
 0x204   :  { %v608_v34 = vrot.slane %v600_v26, %v3519_v2  ;;  %v615_v35 = vrot.slane %v601_v27, %v3519_v2  ;;  %v624_v36 = vrot.slane %v616_v28, %v3519_v2  ;;  %v631_v37 = vrot.slane %v617_v29, %v3519_v2 }
 0x205   :  { %v968_v38 = vrot.slane %v960_v32, %v3519_v2  ;;  %v984_v39 = vrot.slane %v976_v33, %v3519_v2  ;;  %v1028_v40 = vcombine.low %v3582_v24, %v3585_v25  ;;  %v1044_v49 = vcombine.low %v3588_v30, %v3591_v31 }
 0x206   :  { %v704_v41 = vcombine.low %v608_v34, %v615_v35  ;;  %v2683_v42 = vcombine.high %v608_v34, %v615_v35  ;;  %v720_v43 = vcombine.low %v624_v36, %v631_v37  ;;  %v2684_v44 = vcombine.high %v624_v36, %v631_v37 }
 0x207   :  { %v992_v45 = vcombine.low %v968_v38, %v984_v39  ;;  %v1036_v48 = vrot.slane %v1028_v40, %v3519_v2  ;;  %v676_v52 = vrot.slane %v668_v23, %v3519_v2  ;;  %v692_v53 = vrot.slane %v684_v47, %v3519_v2 }
 0x208   :  { %v3609_v50 = vrot.slane %v704_v41, %v3517_v58  ;;  %v3612_v51 = vrot.slane %v2683_v42, %v3517_v58  ;;  %v3617_v54 = vrot.slane %v720_v43, %v3517_v58  ;;  %v3620_v59 = vrot.slane %v2684_v44, %v3517_v58 }
 0x209   :  { %v1364_v60 = vpack.c.bf16 %v992_v45, %v992_v45  ;;  %v1052_v61 = vrot.slane %v1044_v49, %v3519_v2  ;;  %v700_v8 = vcombine.low %v676_v52, %v692_v53  ;;  %v993_v14 = vcombine.high %v968_v38, %v984_v39  ;;  %v2672_v49 = vld [vmem:[%s3927_s8] ss:$0 sm:$0xff] }
 0x20a   :  { %v736_v1 = vcombine.low %v3609_v50, %v3612_v51  ;;  %v752_v7 = vcombine.low %v3617_v54, %v3620_v59  ;;  %v961_v20 = vcombine.high %v3544_v55, %v3547_v56  ;;  %v977_v21 = vcombine.high %v3550_v46, %v3553_v57 }
 0x20b   :  { %v1377_v62 = vsel %vm1372_vm1, %v1364_v60, 0  ;;  %v1060_v63 = vcombine.low %v1036_v48, %v1052_v61  ;;  %v1356_v10 = vpack.c.bf16 %v700_v8, %v700_v8  ;;  %v1366_v16 = vpack.c.bf16 %v993_v14, %v993_v14 }
 0x20c   :  { %2851 = vmatpush3.bf16.xpose.msra.mxu1 %v1377_v62  ;;  %v744_v12 = vrot.slane %v736_v1, %v3519_v2  ;;  %v760_v13 = vrot.slane %v752_v7, %v3519_v2  ;;  %v1061_v19 = vcombine.high %v1036_v48, %v1052_v61  ;;  %v701_v22 = vcombine.high %v676_v52, %v692_v53 }
 0x20d   :  { %2856 = vmatprep.subr.bf16.mxu1 %v3260_v0  ;;  %v1365_v9 = vpack.c.bf16 %v1060_v63, %v1060_v63  ;;  %v1469_v18 = vsel %vm1372_vm1, %v1366_v16, 0  ;;  %v975_v47 = vrot.slane %v961_v20, %v3519_v2  ;;  %v991_v26 = vrot.slane %v977_v21, %v3519_v2 }
 0x20e   :  { %v768_v15 = vcombine.low %v744_v12, %v760_v13  ;;  %v1367_v23 = vpack.c.bf16 %v1061_v19, %v1061_v19  ;;  %v1358_v27 = vpack.c.bf16 %v701_v22, %v701_v22  ;;  %v1029_v46 = vcombine.high %v3582_v24, %v3585_v25 }
 0x20f   :  { %v1423_v11 = vsel %vm1372_vm1, %v1365_v9, 0  ;;  %v994_v56 = vcombine.low %v975_v47, %v991_v26  ;;  %v1045_v57 = vcombine.high %v3588_v30, %v3591_v31  ;;  %v669_v28 = vcombine.high %v3556_v3, %v3559_v4 }
 0x210   :  { %v1357_v17 = vpack.c.bf16 %v768_v15, %v768_v15  ;;  %v1515_v55 = vsel %vm1372_vm1, %v1367_v23, 0  ;;  %v685_v29 = vcombine.high %v3562_v5, %v3565_v6  ;;  %v769_v32 = vcombine.high %v744_v12, %v760_v13 }
 0x211   :  { %v1368_v33 = vpack.c.bf16 %v994_v56, %v994_v56  ;;  %v1043_v34 = vrot.slane %v1029_v46, %v3519_v2  ;;  %v1059_v24 = vrot.slane %v1045_v57, %v3519_v2  ;;  %v683_v30 = vrot.slane %v669_v28, %v3519_v2 }
 0x212   :  { %v1359_v25 = vpack.c.bf16 %v769_v32, %v769_v32  ;;  %v699_v31 = vrot.slane %v685_v29, %v3519_v2  ;;  %v737_v5 = vcombine.high %v3609_v50, %v3612_v51  ;;  %v753_v6 = vcombine.high %v3617_v54, %v3620_v59  ;;  %v473_v51 = vpop.f32.mrb[4].mxu0 }
 0x213   :  { %2853 = vmatmul.mubr.msk.bf16.vlgmr.msra.gmra.mrb[4].mxu1 %vm1372_vm1, %v1356_v10  ;;  %v1561_v3 = vsel %vm1372_vm1, %v1368_v33, 0  ;;  %v1062_v4 = vcombine.low %v1043_v34, %v1059_v24  ;;  %v995_v41 = vcombine.high %v975_v47, %v991_v26  ;;  %v1063_v48 = vcombine.high %v1043_v34, %v1059_v24  ;;  %v2848_v54 = vpop.f32.mrb[5].mxu0 }
 0x214   :  { %2857 = vmatpush3.bf16.xpose.msra.mxu1 %v1423_v11  ;;  %2858 = vmatprep.mubr.msk.bf16.mxu1 %vm3261_vm0, %v3260_v0  ;;  %v702_v35 = vcombine.low %v683_v30, %v699_v31  ;;  %v751_v38 = vrot.slane %v737_v5, %v3519_v2  ;;  %v767_v39 = vrot.slane %v753_v6, %v3519_v2  ;;  %v476_v59 = vpop.f32.mrb[6].mxu0 }
 0x215   :  { %2862 = vmatprep.subr.bf16.mxu1 %v3260_v0  ;;  %v1369_v36 = vpack.c.bf16 %v1062_v4, %v1062_v4  ;;  %v1370_v43 = vpack.c.bf16 %v995_v41, %v995_v41  ;;  %v703_v50 = vcombine.high %v683_v30, %v699_v31  ;;  %v1371_v52 = vpack.c.bf16 %v1063_v48, %v1063_v48  ;;  %v2849_v62 = vpop.f32.mrb[7].mxu0 }
 0x216   :  { %v1360_v37 = vpack.c.bf16 %v702_v35, %v702_v35  ;;  %v770_v42 = vcombine.low %v751_v38, %v767_v39  ;;  %v3688_v53 = vadd.f32 %v2672_v49, %v473_v51  ;;  %v3690_v61 = vadd.f32 %v2672_v49, %v476_v59 }
 0x217   :  { %v1607_v40 = vsel %vm1372_vm1, %v1369_v36, 0  ;;  %v1653_v45 = vsel %vm1372_vm1, %v1370_v43, 0  ;;  %v1362_v60 = vpack.c.bf16 %v703_v50, %v703_v50  ;;  %v1699_v63 = vsel %vm1372_vm1, %v1371_v52, 0 }
 0x218   :  { %v1361_v44 = vpack.c.bf16 %v770_v42, %v770_v42  ;;  %1066 = vrot.lane.b32.xlu1 %v3688_v53, %s3263_s27  ;;  %v771_v1 = vcombine.high %v751_v38, %v767_v39 }
 0x21a   :  { %v1363_v7 = vpack.c.bf16 %v771_v1, %v771_v1 }
 0x21b   :  { %2859 = vmatmul.mubr.msk.bf16.vlgmr.msra.gmra.mrb[8].mxu1 %vm1372_vm1, %v1357_v17 }
 0x21c   :  { %2863 = vmatpush3.bf16.xpose.msra.mxu1 %v1469_v18  ;;  %2864 = vmatprep.mubr.msk.bf16.mxu1 %vm3261_vm0, %v3260_v0 }
 0x21d   :  { %2868 = vmatprep.subr.bf16.mxu1 %v3260_v0 }
 0x223   :  { %2865 = vmatmul.mubr.msk.bf16.vlgmr.msra.gmra.mrb[12].mxu1 %vm1372_vm1, %v1358_v27 }
 0x224   :  { %2869 = vmatpush3.bf16.xpose.msra.mxu1 %v1515_v55  ;;  %2870 = vmatprep.mubr.msk.bf16.mxu1 %vm3261_vm0, %v3260_v0 }
 0x225   :  { %2874 = vmatprep.subr.bf16.mxu1 %v3260_v0 }
 0x22b   :  { %2871 = vmatmul.mubr.msk.bf16.vlgmr.msra.gmra.mrb[16].mxu1 %vm1372_vm1, %v1359_v25 }
 0x22c   :  { %2875 = vmatpush3.bf16.xpose.msra.mxu1 %v1561_v3  ;;  %2876 = vmatprep.mubr.msk.bf16.mxu1 %vm3261_vm0, %v3260_v0 }
 0x22d   :  { %2880 = vmatprep.subr.bf16.mxu1 %v3260_v0 }
 0x233   :  { %2877 = vmatmul.mubr.msk.bf16.vlgmr.msra.gmra.mrb[20].mxu1 %vm1372_vm1, %v1360_v37 }
 0x234   :  { %2881 = vmatpush3.bf16.xpose.msra.mxu1 %v1607_v40  ;;  %2882 = vmatprep.mubr.msk.bf16.mxu1 %vm3261_vm0, %v3260_v0 }
 0x235   :  { %2886 = vmatprep.subr.bf16.mxu1 %v3260_v0 }
 0x23b   :  { %2883 = vmatmul.mubr.msk.bf16.vlgmr.msra.gmra.mrb[24].mxu1 %vm1372_vm1, %v1361_v44 }
 0x23c   :  { %2887 = vmatpush3.bf16.xpose.msra.mxu1 %v1653_v45  ;;  %2888 = vmatprep.mubr.msk.bf16.mxu1 %vm3261_vm0, %v3260_v0 }
 0x23d   :  { %2892 = vmatprep.subr.bf16.mxu1 %v3260_v0 }
 0x243   :  { %2889 = vmatmul.mubr.msk.bf16.vlgmr.msra.gmra.mrb[28].mxu1 %vm1372_vm1, %v1362_v60 }
 0x244   :  { %2893 = vmatpush3.bf16.xpose.msra.mxu1 %v1699_v63  ;;  %2894 = vmatprep.mubr.msk.bf16.mxu1 %vm3261_vm0, %v3260_v0 }
 0x245   :  { %2904 = vmatprep.subr.bf16.mxu1 %v3260_v0 }
 0x24b   :  { %2895 = vmatmul.mubr.msk.bf16.vlgmr.msra.gmra.mrb[32].mxu1 %vm1372_vm1, %v1363_v7 }
 0x24c   :  { %2906 = vmatprep.mubr.msk.bf16.mxu1 %vm3261_vm0, %v3260_v0 }
 0x28a   :  { %v3719_v42 = vpop.permute.xlu1 %1066 }
 0x2e6   :  { %v1413_v8 = vpop.f32.mrb[4].mxu1 }
 0x2e7   :  { %v2854_v9 = vpop.f32.mrb[5].mxu1  ;;  %v1742_v10 = vsel %vm1741_vm2, %v1413_v8, -inf }
 0x2e8   :  { %v1416_v11 = vpop.f32.mrb[6].mxu1  ;;  %1743 = vmax.xlane.f32.xlu0 %v1742_v10 }
 0x2e9   :  { %v2855_v12 = vpop.f32.mrb[7].mxu1 }
 0x2ee   :  { %v1459_v13 = vpop.f32.mrb[8].mxu1 }
 0x2ef   :  { %v2860_v14 = vpop.f32.mrb[9].mxu1  ;;  %v1745_v15 = vsel %vm1741_vm2, %v1459_v13, -inf }
 0x2f0   :  { %v1462_v16 = vpop.f32.mrb[10].mxu1  ;;  %1746 = vmax.xlane.f32.xlu1 %v1745_v15 }
 0x2f1   :  { %v2861_v17 = vpop.f32.mrb[11].mxu1 }
 0x2f6   :  { %v3704_v18 = vpop.f32.mrb[12].mxu1 }
 0x2f7   :  { %v2866_v19 = vpop.f32.mrb[13].mxu1  ;;  %v1748_v20 = vsel %vm1741_vm2, %v3704_v18, -inf }
 0x2f8   :  { %1749 = vmax.xlane.f32.xlu0 %v1748_v20  ;;  %v1508_v21 = vpop.f32.mrb[14].mxu1 }
 0x2f9   :  { %v2867_v22 = vpop.f32.mrb[15].mxu1 }
 0x2fe   :  { %v1551_v23 = vpop.f32.mrb[16].mxu1 }
 0x2ff   :  { %v2872_v47 = vpop.f32.mrb[17].mxu1  ;;  %v1751_v26 = vsel %vm1741_vm2, %v1551_v23, -inf }
 0x300   :  { %1752 = vmax.xlane.f32.xlu0 %v1751_v26  ;;  %v1554_v27 = vpop.f32.mrb[18].mxu1 }
 0x301   :  { %v2873_v55 = vpop.f32.mrb[19].mxu1 }
 0x306   :  { %v1597_v56 = vpop.f32.mrb[20].mxu1 }
 0x307   :  { %v2878_v46 = vpop.f32.mrb[21].mxu1  ;;  %v1754_v57 = vsel %vm1741_vm2, %v1597_v56, -inf }
 0x308   :  { %v1600_v28 = vpop.f32.mrb[22].mxu1  ;;  %1755 = vmax.xlane.f32.xlu1 %v1754_v57 }
 0x309   :  { %v2879_v29 = vpop.f32.mrb[23].mxu1 }
 0x30e   :  { %v1643_v32 = vpop.f32.mrb[24].mxu1 }
 0x30f   :  { %v2884_v33 = vpop.f32.mrb[25].mxu1  ;;  %v1757_v34 = vsel %vm1741_vm2, %v1643_v32, -inf }
 0x310   :  { %1758 = vmax.xlane.f32.xlu0 %v1757_v34  ;;  %v1646_v24 = vpop.f32.mrb[26].mxu1 }
 0x311   :  { %v2885_v25 = vpop.f32.mrb[27].mxu1 }
 0x316   :  { %v1689_v30 = vpop.f32.mrb[28].mxu1 }
 0x317   :  { %v2890_v31 = vpop.f32.mrb[29].mxu1  ;;  %v1760_v3 = vsel %vm1741_vm2, %v1689_v30, -inf }
 0x318   :  { %v1692_v4 = vpop.f32.mrb[30].mxu1  ;;  %1761 = vmax.xlane.f32.xlu1 %v1760_v3 }
 0x319   :  { %v2891_v5 = vpop.f32.mrb[31].mxu1 }
 0x31e   :  { %v1735_v6 = vpop.f32.mrb[32].mxu1 }
 0x31f   :  { %v2896_v35 = vpop.f32.mrb[33].mxu1  ;;  %v1763_v36 = vsel %vm1741_vm2, %v1735_v6, -inf }
 0x320   :  { %1764 = vmax.xlane.f32.xlu0 %v1763_v36  ;;  %v1738_v37 = vpop.f32.mrb[34].mxu1 }
 0x321   :  { %v2897_v38 = vpop.f32.mrb[35].mxu1 }
 0x329   :  { %1072 = vrot.lane.b32.xlu1 %v3688_v53, %s3253_s1 }
 0x32d   :  { %1074 = vrot.lane.b32.xlu1 %v3690_v61, %s3253_s1 }
 0x336   :  { %1068 = vrot.lane.b32.xlu0 %v3690_v61, %s3263_s27 }
 0x375   :  { %v1744_v39 = vpop.xlane.xlu0 %1743 }
 0x376   :  { %v1766_v40 = vsub.f32 %v1413_v8, %v1744_v39 }
 0x378   :  { %v1774_v41 = vmul.f32 1.442695, %v1766_v40 }
 0x37a   :  { %3031 = vpow2.f32 %v1774_v41 }
 0x37d   :  { %v1747_v43 = vpop.xlane.xlu1 %1746 }
 0x37e   :  { %v1767_v44 = vsub.f32 %v1459_v13, %v1747_v43 }
 0x380   :  { %v1776_v45 = vmul.f32 1.442695, %v1767_v44 }
 0x382   :  { %3033 = vpow2.f32 %v1776_v45 }
 0x384   :  { %v3721_v48 = vpop.eup %3031 }
 0x385   :  { %v1790_v49 = vsel %vm1741_vm2, %v3721_v48, 0.0  ;;  %v1750_v52 = vpop.xlane.xlu0 %1749 }
 0x386   :  { %1791 = vadd.xlane.f32.xlu1 %v1790_v49  ;;  %v1768_v7 = vsub.f32 %v3704_v18, %v1750_v52 }
 0x388   :  { %v1778_v9 = vmul.f32 1.442695, %v1768_v7 }
 0x38c   :  { %v3725_v50 = vpop.eup %3033 }
 0x38d   :  { %v1793_v51 = vsel %vm1741_vm2, %v3725_v50, 0.0  ;;  %v1753_v54 = vpop.xlane.xlu0 %1752 }
 0x38e   :  { %1794 = vadd.xlane.f32.xlu0 %v1793_v51  ;;  %v1769_v60 = vsub.f32 %v1551_v23, %v1753_v54 }
 0x390   :  { %v1780_v63 = vmul.f32 1.442695, %v1769_v60 }
 0x392   :  { %3035 = vpow2.f32 %v1780_v63 }
 0x395   :  { %v1756_v59 = vpop.xlane.xlu1 %1755 }
 0x396   :  { %v1770_v10 = vsub.f32 %v1597_v56, %v1756_v59 }
 0x397   :  { %1080 = vrot.lane.b32.xlu1 %v3690_v61, %s3262_s7 }
 0x398   :  { %v1782_v12 = vmul.f32 1.442695, %v1770_v10 }
 0x39c   :  { %v3734_v15 = vpop.eup %3035 }
 0x39d   :  { %v1759_v11 = vpop.xlane.xlu0 %1758  ;;  %v1799_v19 = vsel %vm1741_vm2, %v3734_v15, 0.0 }
 0x39e   :  { %v1771_v13 = vsub.f32 %v1643_v32, %v1759_v11 }
 0x3a0   :  { %v1784_v16 = vmul.f32 1.442695, %v1771_v13 }
 0x3a4   :  { %1078 = vrot.lane.b32.xlu0 %v3688_v53, %s3262_s7 }
 0x3a5   :  { %v1762_v62 = vpop.xlane.xlu1 %1761 }
 0x3a6   :  { %v1772_v1 = vsub.f32 %v1689_v30, %v1762_v62 }
 0x3a8   :  { %v1786_v8 = vmul.f32 1.442695, %v1772_v1 }
 0x3a9   :  { %v1073_v57 = vpop.permute.xlu1 %1072 }
 0x3aa   :  { %3037 = vpow2.f32 %v1786_v8  ;;  %v1084_v43 = vcombine.low %v3688_v53, %v1073_v57  ;;  %v1085_v44 = vcombine.high %v3688_v53, %v1073_v57 }
 0x3ab   :  { %3039 = vpow2.f32 %v1778_v9 }
 0x3ac   :  { %3041 = vpow2.f32 %v1782_v12  ;;  %v1092_v7 = vrot.slane %v1084_v43, %v3517_v58  ;;  %v1099_v8 = vrot.slane %v1085_v44, %v3517_v58 }
 0x3ad   :  { %v1765_v14 = vpop.xlane.xlu0 %1764  ;;  %3043 = vpow2.f32 %v1784_v16  ;;  %v1075_v28 = vpop.permute.xlu1 %1074 }
 0x3ae   :  { %v1773_v17 = vsub.f32 %v1735_v6, %v1765_v14  ;;  %v1152_v32 = vcombine.low %v3690_v61, %v1075_v28  ;;  %v1153_v33 = vcombine.high %v3690_v61, %v1075_v28 }
 0x3b0   :  { %v1788_v18 = vmul.f32 1.442695, %v1773_v17  ;;  %v1160_v31 = vrot.slane %v1152_v32, %v3517_v58  ;;  %v1167_v3 = vrot.slane %v1153_v33, %v3517_v58 }
 0x3b1   :  { %v1069_v34 = vpop.permute.xlu0 %1068 }
 0x3b2   :  { %3045 = vpow2.f32 %v1788_v18 }
 0x3b4   :  { %v3738_v20 = vpop.eup %3037 }
 0x3b5   :  { %v1808_v21 = vsel %vm1741_vm2, %v3738_v20, 0.0  ;;  %v3742_v22 = vpop.eup %3039 }
 0x3b6   :  { %v1796_v23 = vsel %vm1741_vm2, %v3742_v22, 0.0  ;;  %v3746_v47 = vpop.eup %3041 }
 0x3b7   :  { %v1802_v26 = vsel %vm1741_vm2, %v3746_v47, 0.0  ;;  %v3750_v27 = vpop.eup %3043 }
 0x3b8   :  { %v1805_v55 = vsel %vm1741_vm2, %v3750_v27, 0.0 }
 0x3bb   :  { %1800 = vadd.xlane.f32.xlu1 %v1799_v19 }
 0x3bc   :  { %v3754_v56 = vpop.eup %3045 }
 0x3bd   :  { %v1811_v46 = vsel %vm1741_vm2, %v3754_v56, 0.0 }
 0x3bf   :  { %1809 = vadd.xlane.f32.xlu1 %v1808_v21 }
 0x3c3   :  { %1797 = vadd.xlane.f32.xlu0 %v1796_v23 }
 0x3c7   :  { %1803 = vadd.xlane.f32.xlu0 %v1802_v26 }
 0x3cb   :  { %1806 = vadd.xlane.f32.xlu0 %v1805_v55 }
 0x3cf   :  { %1812 = vadd.xlane.f32.xlu0 %v1811_v46 }
 0x413   :  { %v1792_v29 = vpop.xlane.xlu1 %1791 }
 0x417   :  { %v1081_v24 = vpop.permute.xlu1 %1080 }
 0x418   :  { %v1168_v25 = vcombine.low %v1069_v34, %v1081_v24  ;;  %v1169_v30 = vcombine.high %v1069_v34, %v1081_v24 }
 0x41a   :  { %v1176_v4 = vrot.slane %v1168_v25, %v3517_v58  ;;  %v1183_v5 = vrot.slane %v1169_v30, %v3517_v58 }
 0x41b   :  { %v1795_v6 = vpop.xlane.xlu0 %1794 }
 0x41c   :  { %v1184_v35 = vcombine.low %v1160_v31, %v1176_v4  ;;  %v1185_v36 = vcombine.high %v1160_v31, %v1176_v4  ;;  %v1200_v37 = vcombine.low %v1167_v3, %v1183_v5  ;;  %v1201_v38 = vcombine.high %v1167_v3, %v1183_v5 }
 0x41d   :  { %3047 = vrcp.f32 %v1795_v6 }
 0x41e   :  { %v1192_v61 = vrot.slane %v1184_v35, %v3519_v2  ;;  %v1199_v39 = vrot.slane %v1185_v36, %v3519_v2  ;;  %v1208_v40 = vrot.slane %v1200_v37, %v3519_v2  ;;  %v1215_v41 = vrot.slane %v1201_v38, %v3519_v2 }
 0x41f   :  { %v1079_v45 = vpop.permute.xlu0 %1078  ;;  %3049 = vrcp.f32 %v1792_v29 }
 0x420   :  { %v1288_v49 = vcombine.low %v1192_v61, %v1199_v39  ;;  %v2691_v51 = vcombine.high %v1192_v61, %v1199_v39  ;;  %v1304_v52 = vcombine.low %v1208_v40, %v1215_v41  ;;  %v2692_v54 = vcombine.high %v1208_v40, %v1215_v41 }
 0x421   :  { %v1100_v59 = vcombine.low %v3719_v42, %v1079_v45  ;;  %v1101_v60 = vcombine.high %v3719_v42, %v1079_v45 }
 0x422   :  { %v3773_v62 = vrot.slane %v1288_v49, %v3517_v58  ;;  %v3776_v63 = vrot.slane %v2691_v51, %v3517_v58  ;;  %v3779_v1 = vrot.slane %v1304_v52, %v3517_v58  ;;  %v3782_v53 = vrot.slane %v2692_v54, %v3517_v58 }
 0x423   :  { %v1108_v9 = vrot.slane %v1100_v59, %v3517_v58  ;;  %v1115_v42 = vrot.slane %v1101_v60, %v3517_v58 }
 0x424   :  { %v1320_v10 = vcombine.low %v3773_v62, %v3776_v63  ;;  %v1336_v11 = vcombine.low %v3779_v1, %v3782_v53  ;;  %v1337_v54 = vcombine.high %v3779_v1, %v3782_v53 }
 0x425   :  { %v1116_v12 = vcombine.low %v1092_v7, %v1108_v9  ;;  %v1117_v13 = vcombine.high %v1092_v7, %v1108_v9  ;;  %v1132_v14 = vcombine.low %v1099_v8, %v1115_v42  ;;  %v1133_v16 = vcombine.high %v1099_v8, %v1115_v42 }
 0x426   :  { %v1328_v17 = vrot.slane %v1320_v10, %v3519_v2  ;;  %v1344_v19 = vrot.slane %v1336_v11, %v3519_v2  ;;  %v1351_v60 = vrot.slane %v1337_v54, %v3519_v2 }
 0x427   :  { %v3048_v18 = vpop.eup %3047  ;;  %v1124_v21 = vrot.slane %v1116_v12, %v3519_v2  ;;  %v1131_v23 = vrot.slane %v1117_v13, %v3519_v2  ;;  %v1140_v26 = vrot.slane %v1132_v14, %v3519_v2  ;;  %v1147_v55 = vrot.slane %v1133_v16, %v3519_v2 }
 0x428   :  { %v1823_v46 = vmul.f32 %v3048_v18, %v3725_v50  ;;  %v1352_v57 = vcombine.low %v1328_v17, %v1344_v19  ;;  %v1353_v28 = vcombine.high %v1328_v17, %v1344_v19 }
 0x429   :  { %v1220_v32 = vcombine.low %v1124_v21, %v1131_v23  ;;  %v2689_v29 = vcombine.high %v1124_v21, %v1131_v23  ;;  %v1236_v33 = vcombine.low %v1140_v26, %v1147_v55  ;;  %v2690_v34 = vcombine.high %v1140_v26, %v1147_v55  ;;  %v3050_v38 = vpop.eup %3049 }
 0x42a   :  { %v1839_v24 = vpack.c.bf16 %v1352_v57, %v1352_v57  ;;  %v1831_v5 = vpack.c.bf16 %v1823_v46, %v1823_v46  ;;  %v1841_v50 = vpack.c.bf16 %v1353_v28, %v1353_v28  ;;  %v1822_v41 = vmul.f32 %v3050_v38, %v3721_v48 }
 0x42b   :  { %v1227_v25 = vrot.slane %v1220_v32, %v3517_v58  ;;  %v1235_v30 = vrot.slane %v2689_v29, %v3517_v58  ;;  %v1243_v31 = vrot.slane %v1236_v33, %v3517_v58  ;;  %v1251_v3 = vrot.slane %v2690_v34, %v3517_v58 }
 0x42c   :  { %v1897_v4 = vsel %vm1849_vm3, %v1839_v24, 0  ;;  %v1989_v61 = vsel %vm1849_vm3, %v1841_v50, 0  ;;  %v1830_v49 = vpack.c.bf16 %v1822_v41, %v1822_v41  ;;  %v1321_v48 = vcombine.high %v3773_v62, %v3776_v63  ;;  %v3025_v50 = vld [vmem:[#allocation13 + $0x10] sm:$0xff]  }
 0x42d   :  { %2905 = vmatpush3.bf16.msra.mxu1 %v1897_v4  ;;  %v1252_v6 = vcombine.low %v1227_v25, %v1235_v30  ;;  %v1268_v35 = vcombine.low %v1243_v31, %v1251_v3  ;;  %v1253_v9 = vcombine.high %v1227_v25, %v1235_v30  ;;  %v1269_v42 = vcombine.high %v1243_v31, %v1251_v3 }
 0x42e   :  { %2916 = vmatprep.subr.bf16.mxu1 %v3260_v0  ;;  %v1335_v59 = vrot.slane %v1321_v48, %v3519_v2 }
 0x42f   :  { %v1260_v36 = vrot.slane %v1252_v6, %v3519_v2  ;;  %v1276_v37 = vrot.slane %v1268_v35, %v3519_v2  ;;  %v1267_v62 = vrot.slane %v1253_v9, %v3519_v2  ;;  %v1283_v63 = vrot.slane %v1269_v42, %v3519_v2  ;;  %v3026_v6 = vld [vmem:[#allocation13 + $0x18] sm:$0xff]   ;;  %v3027_v35 = vld [vmem:[#allocation13 + $0x20] sm:$0xff]  }
 0x430   :  { %2907 = vmatmul.mubr.msk.bf16.vlgmr.msra.gmra.mrb[36].mxu1 %vm1741_vm2, %v1831_v5  ;;  %v1354_v8 = vcombine.low %v1335_v59, %v1351_v60  ;;  %v1355_v57 = vcombine.high %v1335_v59, %v1351_v60 }
 0x431   :  { %2917 = vmatpush3.bf16.msra.mxu1 %v1989_v61  ;;  %v1284_v39 = vcombine.low %v1260_v36, %v1276_v37  ;;  %v1285_v40 = vcombine.high %v1260_v36, %v1276_v37  ;;  %2918 = vmatprep.mubr.msk.bf16.mxu1 %vm3261_vm0, %v3260_v0  ;;  %v1286_v16 = vcombine.low %v1267_v62, %v1283_v63  ;;  %v3028_v36 = vld [vmem:[#allocation13 + $0x28] sm:$0xff]  }
 0x432   :  { %2928 = vmatprep.subr.bf16.mxu1 %v3260_v0  ;;  %v1843_v12 = vpack.c.bf16 %v1354_v8, %v1354_v8  ;;  %v1287_v46 = vcombine.high %v1267_v62, %v1283_v63  ;;  %v1845_v33 = vpack.c.bf16 %v1355_v57, %v1355_v57 }
 0x433   :  { %v1838_v43 = vpack.c.bf16 %v1284_v39, %v1284_v39  ;;  %v1840_v45 = vpack.c.bf16 %v1285_v40, %v1285_v40  ;;  %v1842_v21 = vpack.c.bf16 %v1286_v16, %v1286_v16 }
 0x434   :  { %v2081_v53 = vsel %vm1849_vm3, %v1843_v12, 0  ;;  %v1844_v29 = vpack.c.bf16 %v1287_v46, %v1287_v46  ;;  %v2173_v3 = vsel %vm1849_vm3, %v1845_v33, 0 }
 0x435   :  { %v1851_v44 = vsel %vm1849_vm3, %v1838_v43, 0  ;;  %v1943_v51 = vsel %vm1849_vm3, %v1840_v45, 0  ;;  %v2035_v55 = vsel %vm1849_vm3, %v1842_v21, 0 }
 0x436   :  { %2899 = vmatpush3.bf16.msra.mxu0 %v1851_v44  ;;  %v2127_v31 = vsel %vm1849_vm3, %v1844_v29, 0 }
 0x437   :  { %2910 = vmatprep.subr.bf16.mxu0 %v3260_v0 }
 0x439   :  { %2901 = vmatmul.mubr.msk.bf16.vlgmr.msra.gmra.mrb[8].mxu0 %vm1741_vm2, %v1830_v49 }
 0x43a   :  { %2911 = vmatpush3.bf16.msra.mxu0 %v1943_v51  ;;  %2912 = vmatprep.mubr.msk.bf16.mxu0 %vm3261_vm0, %v3260_v0 }
 0x43b   :  { %2922 = vmatprep.subr.bf16.mxu0 %v3260_v0 }
 0x448   :  { %v1801_v52 = vpop.xlane.xlu1 %1800 }
 0x449   :  { %3051 = vrcp.f32 %v1801_v52 }
 0x44c   :  { %v1810_v17 = vpop.xlane.xlu1 %1809 }
 0x450   :  { %v1798_v7 = vpop.xlane.xlu0 %1797 }
 0x451   :  { %3053 = vrcp.f32 %v1798_v7 }
 0x453   :  { %v3052_v10 = vpop.eup %3051 }
 0x454   :  { %v1825_v11 = vmul.f32 %v3052_v10, %v3734_v15  ;;  %v1804_v13 = vpop.xlane.xlu0 %1803 }
 0x455   :  { %3055 = vrcp.f32 %v1804_v13 }
 0x456   :  { %v1833_v1 = vpack.c.bf16 %v1825_v11, %v1825_v11 }
 0x458   :  { %2919 = vmatmul.mubr.msk.bf16.vlgmr.msra.gmra.mrb[40].mxu1 %vm1741_vm2, %v1833_v1  ;;  %v1807_v14 = vpop.xlane.xlu0 %1806 }
 0x459   :  { %2929 = vmatpush3.bf16.msra.mxu1 %v2081_v53  ;;  %3057 = vrcp.f32 %v1807_v14  ;;  %2930 = vmatprep.mubr.msk.bf16.mxu1 %vm3261_vm0, %v3260_v0 }
 0x45a   :  { %2940 = vmatprep.subr.bf16.mxu1 %v3260_v0  ;;  %3059 = vrcp.f32 %v1810_v17 }
 0x45b   :  { %v3054_v15 = vpop.eup %3053 }
 0x45c   :  { %v1824_v19 = vmul.f32 %v3054_v15, %v3742_v22  ;;  %v1813_v18 = vpop.xlane.xlu0 %1812 }
 0x45d   :  { %3061 = vrcp.f32 %v1813_v18 }
 0x45e   :  { %v1832_v23 = vpack.c.bf16 %v1824_v19, %v1824_v19 }
 0x45f   :  { %v3056_v26 = vpop.eup %3055 }
 0x460   :  { %2913 = vmatmul.mubr.msk.bf16.vlgmr.msra.gmra.mrb[12].mxu0 %vm1741_vm2, %v1832_v23  ;;  %v1826_v28 = vmul.f32 %v3056_v26, %v3746_v47 }
 0x461   :  { %2923 = vmatpush3.bf16.msra.mxu0 %v2035_v55  ;;  %2924 = vmatprep.mubr.msk.bf16.mxu0 %vm3261_vm0, %v3260_v0 }
 0x462   :  { %2934 = vmatprep.subr.bf16.mxu0 %v3260_v0  ;;  %v1834_v24 = vpack.c.bf16 %v1826_v28, %v1826_v28 }
 0x463   :  { %v3058_v22 = vpop.eup %3057 }
 0x464   :  { %v1827_v32 = vmul.f32 %v3058_v22, %v3750_v27  ;;  %v3060_v34 = vpop.eup %3059 }
 0x465   :  { %v1828_v47 = vmul.f32 %v3060_v34, %v3738_v20  ;;  %v3023_v20 = vld [vmem:[#allocation13] sm:$0xff]  }
 0x466   :  { %v1835_v25 = vpack.c.bf16 %v1827_v32, %v1827_v32 }
 0x467   :  { %v3062_v30 = vpop.eup %3061  ;;  %v1836_v4 = vpack.c.bf16 %v1828_v47, %v1828_v47 }
 0x468   :  { %2925 = vmatmul.mubr.msk.bf16.vlgmr.msra.gmra.mrb[16].mxu0 %vm1741_vm2, %v1834_v24  ;;  %2931 = vmatmul.mubr.msk.bf16.vlgmr.msra.gmra.mrb[44].mxu1 %vm1741_vm2, %v1835_v25  ;;  %v1829_v27 = vmul.f32 %v3062_v30, %v3754_v56  ;;  %v3024_v56 = vld [vmem:[#allocation13 + $0x8] sm:$0xff]  }
 0x469   :  { %2935 = vmatpush3.bf16.msra.mxu0 %v2127_v31  ;;  %2941 = vmatpush3.bf16.msra.mxu1 %v2173_v3 }
 0x46a   :  { %2936 = vmatprep.mubr.msk.bf16.mxu0 %vm3261_vm0, %v3260_v0  ;;  %2942 = vmatprep.mubr.msk.bf16.mxu1 %vm3261_vm0, %v3260_v0  ;;  %v1837_v5 = vpack.c.bf16 %v1829_v27, %v1829_v27 }
 0x46b   :  { %2946 = vmatprep.subr.bf16.mxu0 %v3260_v0 }
 0x470   :  { %2937 = vmatmul.mubr.msk.bf16.vlgmr.msra.gmra.mrb[20].mxu0 %vm1741_vm2, %v1836_v4  ;;  %2943 = vmatmul.mubr.msk.bf16.vlgmr.msra.gmra.mrb[48].mxu1 %vm1741_vm2, %v1837_v5 }
 0x471   :  { %2962 = vmatprep.mubr.msk.bf16.mxu0 %vm3261_vm0, %v3260_v0  ;;  %2947 = vmatpush3.bf16.msra.mxu0 %v3023_v20 }
 0x472   :  { %2948 = vmatprep.subr.bf16.mxu0 %v3260_v0 }
 0x475   :  { %2949 = vmatpush3.bf16.msra.mxu0 %v3024_v56 }
 0x476   :  { %2950 = vmatprep.subr.bf16.mxu0 %v3260_v0 }
 0x479   :  { %2951 = vmatpush3.bf16.msra.mxu0 %v3025_v50 }
 0x47a   :  { %2952 = vmatprep.subr.bf16.mxu0 %v3260_v0 }
 0x47d   :  { %2953 = vmatpush3.bf16.msra.mxu0 %v3026_v6 }
 0x47e   :  { %2954 = vmatprep.subr.bf16.mxu0 %v3260_v0 }
 0x481   :  { %2955 = vmatpush3.bf16.msra.mxu0 %v3027_v35 }
 0x482   :  { %2956 = vmatprep.subr.bf16.mxu0 %v3260_v0 }
 0x485   :  { %2957 = vmatpush3.bf16.msra.mxu0 %v3028_v36 }
 0x486   :  { %2958 = vmatprep.subr.bf16.mxu0 %v3260_v0 }
 0x503   :  { %v1933_v37 = vpop.f32.mrb[36].mxu1 }
 0x504   :  { %v2908_v38 = vpop.f32.mrb[37].mxu1 }
 0x505   :  { %v1936_v61 = vpop.f32.mrb[38].mxu1 }
 0x506   :  { %v2909_v39 = vpop.f32.mrb[39].mxu1 }
 0x50c   :  { %v1887_v40 = vpop.f32.mrb[8].mxu0 }
 0x50d   :  { %v2902_v41 = vpop.f32.mrb[9].mxu0 }
 0x50e   :  { %v1890_v43 = vpop.f32.mrb[10].mxu0 }
 0x50f   :  { %v2903_v44 = vpop.f32.mrb[11].mxu0 }
 0x52b   :  { %v2025_v45 = vpop.f32.mrb[40].mxu1 }
 0x52c   :  { %v2920_v49 = vpop.f32.mrb[41].mxu1 }
 0x52d   :  { %v2028_v51 = vpop.f32.mrb[42].mxu1 }
 0x52e   :  { %v2921_v52 = vpop.f32.mrb[43].mxu1 }
 0x533   :  { %v1979_v48 = vpop.f32.mrb[12].mxu0 }
 0x534   :  { %v2914_v54 = vpop.f32.mrb[13].mxu0 }
 0x535   :  { %v1982_v59 = vpop.f32.mrb[14].mxu0 }
 0x536   :  { %v2915_v60 = vpop.f32.mrb[15].mxu0 }
 0x537   :  { %v3029_v60 = vld [vmem:[#allocation13 + $0x30] sm:$0xff]  }
 0x538   :  { %2959 = vmatpush3.bf16.msra.mxu0 %v3029_v60 }
 0x539   :  { %2960 = vmatprep.subr.bf16.mxu0 %v3260_v0 }
 0x53b   :  { %v2071_v7 = vpop.f32.mrb[16].mxu0  ;;  %v2117_v8 = vpop.f32.mrb[44].mxu1 }
 0x53c   :  { %v2215_v9 = vcombine.low %v1887_v40, %v2071_v7  ;;  %v2216_v42 = vcombine.high %v1887_v40, %v2071_v7  ;;  %v2283_v10 = vcombine.low %v1933_v37, %v2117_v8  ;;  %v2284_v11 = vcombine.high %v1933_v37, %v2117_v8  ;;  %v2926_v12 = vpop.f32.mrb[17].mxu0  ;;  %v2932_v13 = vpop.f32.mrb[45].mxu1 }
 0x53d   :  { %v2074_v62 = vpop.f32.mrb[18].mxu0  ;;  %v2120_v63 = vpop.f32.mrb[46].mxu1 }
 0x53e   :  { %v2927_v1 = vpop.f32.mrb[19].mxu0  ;;  %v2933_v53 = vpop.f32.mrb[47].mxu1  ;;  %v2223_v26 = vrot.slane %v2215_v9, %v3517_v58  ;;  %v2230_v55 = vrot.slane %v2216_v42, %v3517_v58  ;;  %v2291_v24 = vrot.slane %v2283_v10, %v3517_v58  ;;  %v2298_v25 = vrot.slane %v2284_v11, %v3517_v58 }
 0x543   :  { %v2163_v14 = vpop.f32.mrb[20].mxu0  ;;  %v2209_v16 = vpop.f32.mrb[48].mxu1 }
 0x544   :  { %v2231_v17 = vcombine.low %v1979_v48, %v2163_v14  ;;  %v2232_v15 = vcombine.high %v1979_v48, %v2163_v14  ;;  %v2299_v19 = vcombine.low %v2025_v45, %v2209_v16  ;;  %v2300_v18 = vcombine.high %v2025_v45, %v2209_v16  ;;  %v2938_v21 = vpop.f32.mrb[21].mxu0  ;;  %v2944_v23 = vpop.f32.mrb[49].mxu1 }
 0x545   :  { %v2166_v46 = vpop.f32.mrb[22].mxu0  ;;  %v2212_v57 = vpop.f32.mrb[50].mxu1  ;;  %v3030_v23 = vld [vmem:[#allocation13 + $0x38] sm:$0xff]  }
 0x546   :  { %v2239_v28 = vrot.slane %v2231_v17, %v3517_v58  ;;  %v2246_v22 = vrot.slane %v2232_v15, %v3517_v58  ;;  %v2307_v32 = vrot.slane %v2299_v19, %v3517_v58  ;;  %v2314_v29 = vrot.slane %v2300_v18, %v3517_v58  ;;  %v2939_v33 = vpop.f32.mrb[23].mxu0  ;;  %v2945_v34 = vpop.f32.mrb[51].mxu1  ;;  %2961 = vmatpush3.bf16.msra.mxu0 %v3030_v23 }
 0x548   :  { %v2247_v30 = vcombine.low %v2223_v26, %v2239_v28  ;;  %v2248_v31 = vcombine.high %v2223_v26, %v2239_v28  ;;  %v2263_v3 = vcombine.low %v2230_v55, %v2246_v22  ;;  %v2264_v47 = vcombine.high %v2230_v55, %v2246_v22 }
 0x549   :  { %v2315_v27 = vcombine.low %v2291_v24, %v2307_v32  ;;  %v2316_v4 = vcombine.high %v2291_v24, %v2307_v32  ;;  %v2331_v5 = vcombine.low %v2298_v25, %v2314_v29  ;;  %v2332_v20 = vcombine.high %v2298_v25, %v2314_v29 }
 0x54a   :  { %v2255_v56 = vrot.slane %v2247_v30, %v3519_v2  ;;  %v2262_v50 = vrot.slane %v2248_v31, %v3519_v2  ;;  %v2271_v6 = vrot.slane %v2263_v3, %v3519_v2  ;;  %v2278_v35 = vrot.slane %v2264_v47, %v3519_v2 }
 0x54b   :  { %v2323_v36 = vrot.slane %v2315_v27, %v3519_v2  ;;  %v2330_v37 = vrot.slane %v2316_v4, %v3519_v2  ;;  %v2339_v38 = vrot.slane %v2331_v5, %v3519_v2  ;;  %v2346_v61 = vrot.slane %v2332_v20, %v3519_v2 }
 0x54c   :  { %v2351_v39 = vcombine.low %v2255_v56, %v2262_v50  ;;  %v2709_v40 = vcombine.high %v2255_v56, %v2262_v50  ;;  %v2367_v41 = vcombine.low %v2271_v6, %v2278_v35  ;;  %v2710_v43 = vcombine.high %v2271_v6, %v2278_v35 }
 0x54d   :  { %v2419_v44 = vcombine.low %v2323_v36, %v2330_v37  ;;  %v2711_v45 = vcombine.high %v2323_v36, %v2330_v37  ;;  %v2435_v49 = vcombine.low %v2339_v38, %v2346_v61  ;;  %v2712_v51 = vcombine.high %v2339_v38, %v2346_v61  ;;  %v2713_v37 = vld [vmem:[%s3929_s10] ss:$0 sm:$0xff] }
 0x54e   :  { %v2358_v52 = vrot.slane %v2351_v39, %v3517_v58  ;;  %v2366_v48 = vrot.slane %v2709_v40, %v3517_v58  ;;  %v2374_v54 = vrot.slane %v2367_v41, %v3517_v58  ;;  %v2382_v59 = vrot.slane %v2710_v43, %v3517_v58 }
 0x54f   :  { %v2426_v7 = vrot.slane %v2419_v44, %v3517_v58  ;;  %v2434_v8 = vrot.slane %v2711_v45, %v3517_v58  ;;  %v2442_v9 = vrot.slane %v2435_v49, %v3517_v58  ;;  %v2450_v42 = vrot.slane %v2712_v51, %v3517_v58 }
 0x550   :  { %v2384_v10 = vcombine.high %v2358_v52, %v2366_v48  ;;  %v2400_v11 = vcombine.high %v2374_v54, %v2382_v59  ;;  %v2383_v12 = vcombine.low %v2358_v52, %v2366_v48  ;;  %v2399_v13 = vcombine.low %v2374_v54, %v2382_v59 }
 0x551   :  { %v2452_v62 = vcombine.high %v2426_v7, %v2434_v8  ;;  %v2468_v63 = vcombine.high %v2442_v9, %v2450_v42  ;;  %v2451_v1 = vcombine.low %v2426_v7, %v2434_v8  ;;  %v2467_v53 = vcombine.low %v2442_v9, %v2450_v42 }
 0x552   :  { %v2398_v14 = vrot.slane %v2384_v10, %v3519_v2  ;;  %v2414_v16 = vrot.slane %v2400_v11, %v3519_v2  ;;  %v2391_v17 = vrot.slane %v2383_v12, %v3519_v2  ;;  %v2407_v15 = vrot.slane %v2399_v13, %v3519_v2 }
 0x553   :  { %v2466_v58 = vrot.slane %v2452_v62, %v3519_v2  ;;  %v2482_v19 = vrot.slane %v2468_v63, %v3519_v2  ;;  %v2459_v18 = vrot.slane %v2451_v1, %v3519_v2  ;;  %v2475_v21 = vrot.slane %v2467_v53, %v3519_v2 }
 0x554   :  { %v2417_v26 = vcombine.low %v2398_v14, %v2414_v16  ;;  %v2416_v55 = vcombine.high %v2391_v17, %v2407_v15  ;;  %v2415_v0 = vcombine.low %v2391_v17, %v2407_v15  ;;  %v2418_v46 = vcombine.high %v2398_v14, %v2414_v16 }
 0x555   :  { %v2485_v57 = vcombine.low %v2466_v58, %v2482_v19  ;;  %v2483_v28 = vcombine.low %v2459_v18, %v2475_v21  ;;  %v2484_v22 = vcombine.high %v2459_v18, %v2475_v21  ;;  %v2486_v32 = vcombine.high %v2466_v58, %v2482_v19 }
 0x557   :  { %v2989_v29 = vpack.i.bf16 %v2485_v57, %v2417_v26  ;;  %v2984_v33 = vpack.i.bf16 %v2484_v22, %v2416_v55  ;;  %v2994_v34 = vpack.i.bf16 %v2486_v32, %v2418_v46 }
 0x559   :  { %2990 = vrot.lane.b32.xlu0 %v2989_v29, %s3253_s1  ;;  %2985 = vrot.lane.b32.xlu1 %v2984_v33, %s3262_s7 }
 0x55d   :  { %2995 = vrot.lane.b32.xlu1 %v2994_v34, %s3263_s27 }
 0x5cb   :  { %v2991_v2 = vpop.permute.xlu0 %2990  ;;  %v2986_v24 = vpop.permute.xlu1 %2985 }
 0x5cc   :  { %v2988_v25 = vunpack.i.h.bf16 %v2986_v24  ;;  %v2987_v30 = vunpack.i.l.bf16 %v2986_v24  ;;  %v2993_v31 = vunpack.i.h.bf16 %v2991_v2  ;;  %v2992_v3 = vunpack.i.l.bf16 %v2991_v2 }
 0x5ce   :  { %v2512_v47 = vsel %vm1372_vm1, %v2483_v28, %v2988_v25  ;;  %v2511_v27 = vsel %vm1372_vm1, %v2415_v0, %v2987_v30 }
 0x5cf   :  { %v2996_v4 = vpop.permute.xlu1 %2995  ;;  %v2514_v56 = vsel %vm2513_vm4, %v2511_v27, %v2992_v3  ;;  %v2515_v50 = vsel %vm2513_vm4, %v2512_v47, %v2993_v31 }
 0x5d0   :  { %v2998_v5 = vunpack.i.h.bf16 %v2996_v4  ;;  %v2997_v20 = vunpack.i.l.bf16 %v2996_v4 }
 0x5d2   :  { %v2517_v6 = vsel %vm2516_vm5, %v2514_v56, %v2997_v20  ;;  %v2518_v35 = vsel %vm2516_vm5, %v2515_v50, %v2998_v5 }
 0x5d3   :  { %v2519_v36 = vpack.c.bf16 %v2518_v35, %v2517_v6 }
 0x5d5   :  { %2963 = vmatmul.mubr.bf16.vlgmr.msra.gmra.mrb[24].mxu0 %v2519_v36 }
 0x6a8   :  { %v2625_v38 = vpop.f32.mrb[24].mxu0 }
 0x6a9   :  { %v2626_v61 = vadd.f32 %v2713_v37, %v2625_v38  ;;  %v2964_v39 = vpop.f32.mrb[25].mxu0 }
 0x6aa   :  { %v2628_v40 = vpop.f32.mrb[26].mxu0 }
 0x6ab   :  { %2632 = vst [vmem:[#allocation14] sm:$0xff] %v2626_v61  ;;  %v2629_v41 = vadd.f32 %v2713_v37, %v2628_v40  ;;  %v2965_v43 = vpop.f32.mrb[27].mxu0 }
 0x6ad   :  { %2633 = vst [vmem:[#allocation14 + $0x8] sm:$0xff] %v2629_v41 }
 0x6ae   :  { %3228 = shalt.err (!%p3225_p4)
}
 0x6af   :  { %s3229_s17 = scalar_lea.hbm %s3930_s11, 256 }
 0x6b0   :  { %p3230_p5 = scmp.ne.s32.totalorder %s3930_s11, %s3229_s17  ;;  %p3233_p6 = scmp.lt.u32.totalorder %s3229_s17, %s3930_s11 }
 0x6b2   :  { %p3235_p7 = pnand %p3233_p6, %p3230_p5 }
 0x6b4   :  { %3238 = shalt.err (!%p3235_p7)
}
 0x6b5   :  { %2645 = dma.vmem_to_hbm [thread:$0]  %s2640_s19, 256, %s3930_s11, [#allocation4], %s3251_s29, %s3251_s29, %s3252_s30  }
 0x6b6   :  { %3247 = dma.done.wait [#allocation4], 256  }
 0x6b7   :  { %3248 = vsyncadd [#allocation4], 4294967040 }
 0x6b8   :  { %2649 = vsyncpa [#allocation3], 1 }
 0x6b9   :  { %2650 = vsyncpa [#allocation6], 1 }
 0x6ba   :  { %2651 = vsyncpa [#allocation9], 1 }
 0x6bb   :  { %2652 = vsyncpa [#allocation12], 1 }
 0x6bc   :  { %2653 = vsyncpa [#allocation4], 1 }

</bundles_post_ra>
